<compile_context>
chip_gen: v5e
topology: v5e:2x2
jax: 0.10.0
libtpu: 0.0.40
codegen_flags: <defaults>
</compile_context>

<pallas_src>
import functools
import numpy as np
import jax
import jax.numpy as jnp
from jax import lax
from jax.experimental import pallas as pl
from jax.experimental.pallas import tpu as pltpu


def gaussian_1d(window_size: int, sigma: float) -> np.ndarray:
    xs = np.arange(window_size, dtype=np.float64)
    g = np.exp(-((xs - window_size // 2) ** 2) / (2.0 * sigma ** 2))
    return g / g.sum()


def get_gaussian_kernel2d(ksize, sigma) -> np.ndarray:
    kx = gaussian_1d(ksize[0], sigma[0])
    ky = gaussian_1d(ksize[1], sigma[1])
    return np.outer(kx, ky).astype(np.float32)


def _ssim_kernel(x1_ref, x2_ref, out_ref, *, taps, H, W, Wp, LG, C1, C2):
    """One grid step = one lane-packed block of LG padded channel-images.

    x1_ref / x2_ref : (1, Hp, LW) f32, LW = LG*Wp + ws-1 (zero padded)
    out_ref         : (1, 8, 128) per-block partial loss sum at [0, 0, 0]
    """
    ws = len(taps)
    LWo = LG * Wp                       # width of valid horizontal-conv output

    x1 = x1_ref[0]                      # (Hp, LW)
    x2 = x2_ref[0]

    srcs = (x1, x2, x1 * x1, x2 * x2, x1 * x2)

    # Separable Gaussian, vertical (cheap sublane-offset slices) pass first...
    def vpass(s):
        acc = taps[0] * s[0:H, :]
        for u in range(1, ws):
            acc = acc + taps[u] * s[u:u + H, :]
        return acc                      # (H, LW)

    v1, v2, v11, v22, v12 = [vpass(s) for s in srcs]

    # ...then the horizontal (lane-offset slices) pass.
    def hpass(s):
        acc = taps[0] * s[:, 0:LWo]
        for v in range(1, ws):
            acc = acc + taps[v] * s[:, v:v + LWo]
        return acc                      # (H, LWo)

    mu1 = hpass(v1)
    mu2 = hpass(v2)
    e11 = hpass(v11)
    e22 = hpass(v22)
    e12 = hpass(v12)

    mu1_sq = mu1 * mu1
    mu2_sq = mu2 * mu2
    mu1_mu2 = mu1 * mu2
    sigma1_sq = e11 - mu1_sq
    sigma2_sq = e22 - mu2_sq
    sigma12 = e12 - mu1_mu2

    ssim_map = ((2.0 * mu1_mu2 + C1) * (2.0 * sigma12 + C2)) / (
        (mu1_sq + mu2_sq + C1) * (sigma1_sq + sigma2_sq + C2))
    loss = jnp.clip(1.0 - ssim_map, 0.0, 1.0) * 0.5

    # Mask the 2*pad cross-contaminated "gap" columns between packed images.
    # Phantom all-zero pad images already yield loss == 0 (SSIM(0,0) == 1).
    col = lax.broadcasted_iota(jnp.int32, (H, LWo), 1)
    loss = jnp.where((col % Wp) < W, loss, 0.0)

    psum = jnp.sum(loss)                # single reduce per block (no RMW dep)

    r = lax.broadcasted_iota(jnp.int32, (1, 8, 128), 1)
    c = lax.broadcasted_iota(jnp.int32, (1, 8, 128), 2)
    out_ref[...] = jnp.where((r == 0) & (c == 0), psum, 0.0)


def ssim_loss(img1: jax.Array, img2: jax.Array, window_size: int = 5,
              max_val: float = 1.0) -> jax.Array:
    """Equivalent of SSIM(window_size, max_val)(img1, img2) -> scalar mean loss."""
    assert img1.shape == img2.shape and img1.ndim == 4
    B, C, H, W = img1.shape
    BC = B * C
    pad = (window_size - 1) // 2
    ws = window_size
    Hp, Wp = H + 2 * pad, W + 2 * pad

    taps = tuple(float(t) for t in gaussian_1d(ws, 1.5).astype(np.float32))
    C1 = float((0.01 * max_val) ** 2)
    C2 = float((0.03 * max_val) ** 2)

    # Images packed along the lane axis per block: target >=256 lanes, capped
    # by a ~2 MiB-per-input-block VMEM budget (safe for the default scoped
    # VMEM limit and for v7x's smaller 64 MiB VMEM).
    lane_target = 256
    lg = -(-lane_target // Wp)                              # ceil
    vmem_cap = max(1, (2 * 1024 * 1024) // (Hp * Wp * 4))
    LG = max(1, min(BC, lg, vmem_cap))
    NB = -(-BC // LG)                                       # grid size
    LW = LG * Wp + (ws - 1)

    def prep(x):
        x = x.astype(jnp.float32).reshape(BC, H, W)
        # zero-pad spatially (matches F.conv2d padding=pad) and pad the
        # channel axis to NB*LG with all-zero phantom images.
        x = jnp.pad(x, ((0, NB * LG - BC), (pad, pad), (pad, pad)))
        # lay LG padded images side-by-side along the lane (last) axis, plus
        # ws-1 trailing zero columns so horizontal tap slices stay in-bounds.
        x = x.reshape(NB, LG, Hp, Wp).transpose(0, 2, 1, 3).reshape(NB, Hp, LG * Wp)
        return jnp.pad(x, ((0, 0), (0, 0), (0, ws - 1)))
        # TODO(synk): for production-size images, replace this materialized
        # pad/pack with in-kernel halo loads + 128-lane width strips.

    x1p = prep(img1)
    x2p = prep(img2)

    kernel = functools.partial(
        _ssim_kernel, taps=taps, H=H, W=W, Wp=Wp, LG=LG, C1=C1, C2=C2)

    partial = pl.pallas_call(
        kernel,
        out_shape=jax.ShapeDtypeStruct((NB, 8, 128), jnp.float32),
        grid_spec=pltpu.PrefetchScalarGridSpec(
            num_scalar_prefetch=0,
            grid=(NB,),
            in_specs=[
                pl.BlockSpec((1, Hp, LW), lambda i: (i, 0, 0)),
                pl.BlockSpec((1, Hp, LW), lambda i: (i, 0, 0)),
            ],
            out_specs=pl.BlockSpec((1, 8, 128), lambda i: (i, 0, 0)),
        ),
        compiler_params=pltpu.CompilerParams(
            dimension_semantics=("parallel",)),   # independent blocks -> 2 TCs on v7x
    )(x1p, x2p)

    # Final reduction + mean in JAX (exact: non-written lanes are 0.0).
    return jnp.sum(partial) / float(BC * H * W)


def _ssim_loss_ref(img1, img2, window_size=5, max_val=1.0):
    """Pure-JAX reference (mirrors the PyTorch module) for validation."""
    B, C, H, W = img1.shape
    pad = (window_size - 1) // 2
    window = jnp.asarray(get_gaussian_kernel2d((window_size, window_size), (1.5, 1.5)))
    kern = jnp.tile(window[None, None], (C, 1, 1, 1))  # (C,1,ws,ws)
    C1 = (0.01 * max_val) ** 2
    C2 = (0.03 * max_val) ** 2

    def f2d(x):
        return jax.lax.conv_general_dilated(
            x, kern, window_strides=(1, 1), padding=[(pad, pad), (pad, pad)],
            dimension_numbers=("NCHW", "OIHW", "NCHW"), feature_group_count=C)

    mu1, mu2 = f2d(img1), f2d(img2)
    mu1_sq, mu2_sq, mu1_mu2 = mu1 ** 2, mu2 ** 2, mu1 * mu2
    sigma1_sq = f2d(img1 * img1) - mu1_sq
    sigma2_sq = f2d(img2 * img2) - mu2_sq
    sigma12 = f2d(img1 * img2) - mu1_mu2
    ssim_map = (2 * mu1_mu2 + C1) * (2 * sigma12 + C2) / (
        (mu1_sq + mu2_sq + C1) * (sigma1_sq + sigma2_sq + C2))
    return jnp.mean(jnp.clip(1.0 - ssim_map, 0.0, 1.0) / 2.0)


if __name__ == "__main__":
    key = jax.random.PRNGKey(0)
    k1, k2 = jax.random.split(key)
    B, C, H, W = 2, 4, 16, 16
    img1 = jax.random.uniform(k1, (B, C, H, W), dtype=jnp.float32)
    img2 = jax.random.uniform(k2, (B, C, H, W), dtype=jnp.float32)

    out = ssim_loss(img1, img2, window_size=5, max_val=1.0)
    out = jax.block_until_ready(out)

    ref = jax.block_until_ready(_ssim_loss_ref(img1, img2, window_size=5, max_val=1.0))
    # slightly looser tolerance: separable 1D passes reorder the tap summation
    np.testing.assert_allclose(np.asarray(out), np.asarray(ref), rtol=2e-5, atol=2e-6)

    print("KERNEL_OK")
</pallas_src>

<mosaic_0001>
module attributes {stable_mosaic.version = 11 : i64} {
  func.func @_ssim_kernel(%arg0: i32, %arg1: memref<1x20x164xf32, #tpu.memory_space<vmem>>, %arg2: memref<1x20x164xf32, #tpu.memory_space<vmem>>, %arg3: memref<1x8x128xf32, #tpu.memory_space<vmem>>) attributes {dimension_semantics = [#tpu.dimension_semantics<parallel>], iteration_bounds = array<i64: 1>, scalar_prefetch = 0 : i64, scratch_operands = 0 : i64, tpu.core_type = #tpu.core_type<tc>, window_params = [{transform_indices = @transform_0, window_bounds = array<i64: 1, 20, 164>}, {transform_indices = @transform_1, window_bounds = array<i64: 1, 20, 164>}, {transform_indices = @transform_2, window_bounds = array<i64: 1, 8, 128>}]} {
    %c0 = arith.constant 0 : index
    %c0_0 = arith.constant 0 : index
    %c0_1 = arith.constant 0 : index
    %0 = vector.load %arg1[%c0, %c0_0, %c0_1] : memref<1x20x164xf32, #tpu.memory_space<vmem>>, vector<1x20x164xf32>
    %1 = vector.shape_cast %0 : vector<1x20x164xf32> to vector<20x164xf32>
    %c0_2 = arith.constant 0 : index
    %c0_3 = arith.constant 0 : index
    %c0_4 = arith.constant 0 : index
    %2 = vector.load %arg2[%c0_2, %c0_3, %c0_4] : memref<1x20x164xf32, #tpu.memory_space<vmem>>, vector<1x20x164xf32>
    %3 = vector.shape_cast %2 : vector<1x20x164xf32> to vector<20x164xf32>
    %4 = arith.mulf %1, %1 : vector<20x164xf32>
    %5 = arith.mulf %3, %3 : vector<20x164xf32>
    %6 = arith.mulf %1, %3 : vector<20x164xf32>
    %7 = vector.extract_strided_slice %1 {offsets = [0, 0], sizes = [16, 164], strides = [1, 1]} : vector<20x164xf32> to vector<16x164xf32>
    %cst = arith.constant 0.120078385 : f32
    %8 = vector.broadcast %cst : f32 to vector<16x164xf32>
    %9 = arith.mulf %8, %7 : vector<16x164xf32>
    %10 = vector.extract_strided_slice %1 {offsets = [1, 0], sizes = [16, 164], strides = [1, 1]} : vector<20x164xf32> to vector<16x164xf32>
    %cst_5 = arith.constant 0.233880758 : f32
    %11 = vector.broadcast %cst_5 : f32 to vector<16x164xf32>
    %12 = arith.mulf %11, %10 : vector<16x164xf32>
    %13 = arith.addf %9, %12 : vector<16x164xf32>
    %14 = vector.extract_strided_slice %1 {offsets = [2, 0], sizes = [16, 164], strides = [1, 1]} : vector<20x164xf32> to vector<16x164xf32>
    %cst_6 = arith.constant 0.292081714 : f32
    %15 = vector.broadcast %cst_6 : f32 to vector<16x164xf32>
    %16 = arith.mulf %15, %14 : vector<16x164xf32>
    %17 = arith.addf %13, %16 : vector<16x164xf32>
    %18 = vector.extract_strided_slice %1 {offsets = [3, 0], sizes = [16, 164], strides = [1, 1]} : vector<20x164xf32> to vector<16x164xf32>
    %cst_7 = arith.constant 0.233880758 : f32
    %19 = vector.broadcast %cst_7 : f32 to vector<16x164xf32>
    %20 = arith.mulf %19, %18 : vector<16x164xf32>
    %21 = arith.addf %17, %20 : vector<16x164xf32>
    %22 = vector.extract_strided_slice %1 {offsets = [4, 0], sizes = [16, 164], strides = [1, 1]} : vector<20x164xf32> to vector<16x164xf32>
    %cst_8 = arith.constant 0.120078385 : f32
    %23 = vector.broadcast %cst_8 : f32 to vector<16x164xf32>
    %24 = arith.mulf %23, %22 : vector<16x164xf32>
    %25 = arith.addf %21, %24 : vector<16x164xf32>
    %26 = vector.extract_strided_slice %3 {offsets = [0, 0], sizes = [16, 164], strides = [1, 1]} : vector<20x164xf32> to vector<16x164xf32>
    %cst_9 = arith.constant 0.120078385 : f32
    %27 = vector.broadcast %cst_9 : f32 to vector<16x164xf32>
    %28 = arith.mulf %27, %26 : vector<16x164xf32>
    %29 = vector.extract_strided_slice %3 {offsets = [1, 0], sizes = [16, 164], strides = [1, 1]} : vector<20x164xf32> to vector<16x164xf32>
    %cst_10 = arith.constant 0.233880758 : f32
    %30 = vector.broadcast %cst_10 : f32 to vector<16x164xf32>
    %31 = arith.mulf %30, %29 : vector<16x164xf32>
    %32 = arith.addf %28, %31 : vector<16x164xf32>
    %33 = vector.extract_strided_slice %3 {offsets = [2, 0], sizes = [16, 164], strides = [1, 1]} : vector<20x164xf32> to vector<16x164xf32>
    %cst_11 = arith.constant 0.292081714 : f32
    %34 = vector.broadcast %cst_11 : f32 to vector<16x164xf32>
    %35 = arith.mulf %34, %33 : vector<16x164xf32>
    %36 = arith.addf %32, %35 : vector<16x164xf32>
    %37 = vector.extract_strided_slice %3 {offsets = [3, 0], sizes = [16, 164], strides = [1, 1]} : vector<20x164xf32> to vector<16x164xf32>
    %cst_12 = arith.constant 0.233880758 : f32
    %38 = vector.broadcast %cst_12 : f32 to vector<16x164xf32>
    %39 = arith.mulf %38, %37 : vector<16x164xf32>
    %40 = arith.addf %36, %39 : vector<16x164xf32>
    %41 = vector.extract_strided_slice %3 {offsets = [4, 0], sizes = [16, 164], strides = [1, 1]} : vector<20x164xf32> to vector<16x164xf32>
    %cst_13 = arith.constant 0.120078385 : f32
    %42 = vector.broadcast %cst_13 : f32 to vector<16x164xf32>
    %43 = arith.mulf %42, %41 : vector<16x164xf32>
    %44 = arith.addf %40, %43 : vector<16x164xf32>
    %45 = vector.extract_strided_slice %4 {offsets = [0, 0], sizes = [16, 164], strides = [1, 1]} : vector<20x164xf32> to vector<16x164xf32>
    %cst_14 = arith.constant 0.120078385 : f32
    %46 = vector.broadcast %cst_14 : f32 to vector<16x164xf32>
    %47 = arith.mulf %46, %45 : vector<16x164xf32>
    %48 = vector.extract_strided_slice %4 {offsets = [1, 0], sizes = [16, 164], strides = [1, 1]} : vector<20x164xf32> to vector<16x164xf32>
    %cst_15 = arith.constant 0.233880758 : f32
    %49 = vector.broadcast %cst_15 : f32 to vector<16x164xf32>
    %50 = arith.mulf %49, %48 : vector<16x164xf32>
    %51 = arith.addf %47, %50 : vector<16x164xf32>
    %52 = vector.extract_strided_slice %4 {offsets = [2, 0], sizes = [16, 164], strides = [1, 1]} : vector<20x164xf32> to vector<16x164xf32>
    %cst_16 = arith.constant 0.292081714 : f32
    %53 = vector.broadcast %cst_16 : f32 to vector<16x164xf32>
    %54 = arith.mulf %53, %52 : vector<16x164xf32>
    %55 = arith.addf %51, %54 : vector<16x164xf32>
    %56 = vector.extract_strided_slice %4 {offsets = [3, 0], sizes = [16, 164], strides = [1, 1]} : vector<20x164xf32> to vector<16x164xf32>
    %cst_17 = arith.constant 0.233880758 : f32
    %57 = vector.broadcast %cst_17 : f32 to vector<16x164xf32>
    %58 = arith.mulf %57, %56 : vector<16x164xf32>
    %59 = arith.addf %55, %58 : vector<16x164xf32>
    %60 = vector.extract_strided_slice %4 {offsets = [4, 0], sizes = [16, 164], strides = [1, 1]} : vector<20x164xf32> to vector<16x164xf32>
    %cst_18 = arith.constant 0.120078385 : f32
    %61 = vector.broadcast %cst_18 : f32 to vector<16x164xf32>
    %62 = arith.mulf %61, %60 : vector<16x164xf32>
    %63 = arith.addf %59, %62 : vector<16x164xf32>
    %64 = vector.extract_strided_slice %5 {offsets = [0, 0], sizes = [16, 164], strides = [1, 1]} : vector<20x164xf32> to vector<16x164xf32>
    %cst_19 = arith.constant 0.120078385 : f32
    %65 = vector.broadcast %cst_19 : f32 to vector<16x164xf32>
    %66 = arith.mulf %65, %64 : vector<16x164xf32>
    %67 = vector.extract_strided_slice %5 {offsets = [1, 0], sizes = [16, 164], strides = [1, 1]} : vector<20x164xf32> to vector<16x164xf32>
    %cst_20 = arith.constant 0.233880758 : f32
    %68 = vector.broadcast %cst_20 : f32 to vector<16x164xf32>
    %69 = arith.mulf %68, %67 : vector<16x164xf32>
    %70 = arith.addf %66, %69 : vector<16x164xf32>
    %71 = vector.extract_strided_slice %5 {offsets = [2, 0], sizes = [16, 164], strides = [1, 1]} : vector<20x164xf32> to vector<16x164xf32>
    %cst_21 = arith.constant 0.292081714 : f32
    %72 = vector.broadcast %cst_21 : f32 to vector<16x164xf32>
    %73 = arith.mulf %72, %71 : vector<16x164xf32>
    %74 = arith.addf %70, %73 : vector<16x164xf32>
    %75 = vector.extract_strided_slice %5 {offsets = [3, 0], sizes = [16, 164], strides = [1, 1]} : vector<20x164xf32> to vector<16x164xf32>
    %cst_22 = arith.constant 0.233880758 : f32
    %76 = vector.broadcast %cst_22 : f32 to vector<16x164xf32>
    %77 = arith.mulf %76, %75 : vector<16x164xf32>
    %78 = arith.addf %74, %77 : vector<16x164xf32>
    %79 = vector.extract_strided_slice %5 {offsets = [4, 0], sizes = [16, 164], strides = [1, 1]} : vector<20x164xf32> to vector<16x164xf32>
    %cst_23 = arith.constant 0.120078385 : f32
    %80 = vector.broadcast %cst_23 : f32 to vector<16x164xf32>
    %81 = arith.mulf %80, %79 : vector<16x164xf32>
    %82 = arith.addf %78, %81 : vector<16x164xf32>
    %83 = vector.extract_strided_slice %6 {offsets = [0, 0], sizes = [16, 164], strides = [1, 1]} : vector<20x164xf32> to vector<16x164xf32>
    %cst_24 = arith.constant 0.120078385 : f32
    %84 = vector.broadcast %cst_24 : f32 to vector<16x164xf32>
    %85 = arith.mulf %84, %83 : vector<16x164xf32>
    %86 = vector.extract_strided_slice %6 {offsets = [1, 0], sizes = [16, 164], strides = [1, 1]} : vector<20x164xf32> to vector<16x164xf32>
    %cst_25 = arith.constant 0.233880758 : f32
    %87 = vector.broadcast %cst_25 : f32 to vector<16x164xf32>
    %88 = arith.mulf %87, %86 : vector<16x164xf32>
    %89 = arith.addf %85, %88 : vector<16x164xf32>
    %90 = vector.extract_strided_slice %6 {offsets = [2, 0], sizes = [16, 164], strides = [1, 1]} : vector<20x164xf32> to vector<16x164xf32>
    %cst_26 = arith.constant 0.292081714 : f32
    %91 = vector.broadcast %cst_26 : f32 to vector<16x164xf32>
    %92 = arith.mulf %91, %90 : vector<16x164xf32>
    %93 = arith.addf %89, %92 : vector<16x164xf32>
    %94 = vector.extract_strided_slice %6 {offsets = [3, 0], sizes = [16, 164], strides = [1, 1]} : vector<20x164xf32> to vector<16x164xf32>
    %cst_27 = arith.constant 0.233880758 : f32
    %95 = vector.broadcast %cst_27 : f32 to vector<16x164xf32>
    %96 = arith.mulf %95, %94 : vector<16x164xf32>
    %97 = arith.addf %93, %96 : vector<16x164xf32>
    %98 = vector.extract_strided_slice %6 {offsets = [4, 0], sizes = [16, 164], strides = [1, 1]} : vector<20x164xf32> to vector<16x164xf32>
    %cst_28 = arith.constant 0.120078385 : f32
    %99 = vector.broadcast %cst_28 : f32 to vector<16x164xf32>
    %100 = arith.mulf %99, %98 : vector<16x164xf32>
    %101 = arith.addf %97, %100 : vector<16x164xf32>
    %102 = vector.extract_strided_slice %25 {offsets = [0, 0], sizes = [16, 160], strides = [1, 1]} : vector<16x164xf32> to vector<16x160xf32>
    %cst_29 = arith.constant 0.120078385 : f32
    %103 = vector.broadcast %cst_29 : f32 to vector<16x160xf32>
    %104 = arith.mulf %103, %102 : vector<16x160xf32>
    %105 = vector.extract_strided_slice %25 {offsets = [0, 1], sizes = [16, 160], strides = [1, 1]} : vector<16x164xf32> to vector<16x160xf32>
    %cst_30 = arith.constant 0.233880758 : f32
    %106 = vector.broadcast %cst_30 : f32 to vector<16x160xf32>
    %107 = arith.mulf %106, %105 : vector<16x160xf32>
    %108 = arith.addf %104, %107 : vector<16x160xf32>
    %109 = vector.extract_strided_slice %25 {offsets = [0, 2], sizes = [16, 160], strides = [1, 1]} : vector<16x164xf32> to vector<16x160xf32>
    %cst_31 = arith.constant 0.292081714 : f32
    %110 = vector.broadcast %cst_31 : f32 to vector<16x160xf32>
    %111 = arith.mulf %110, %109 : vector<16x160xf32>
    %112 = arith.addf %108, %111 : vector<16x160xf32>
    %113 = vector.extract_strided_slice %25 {offsets = [0, 3], sizes = [16, 160], strides = [1, 1]} : vector<16x164xf32> to vector<16x160xf32>
    %cst_32 = arith.constant 0.233880758 : f32
    %114 = vector.broadcast %cst_32 : f32 to vector<16x160xf32>
    %115 = arith.mulf %114, %113 : vector<16x160xf32>
    %116 = arith.addf %112, %115 : vector<16x160xf32>
    %117 = vector.extract_strided_slice %25 {offsets = [0, 4], sizes = [16, 160], strides = [1, 1]} : vector<16x164xf32> to vector<16x160xf32>
    %cst_33 = arith.constant 0.120078385 : f32
    %118 = vector.broadcast %cst_33 : f32 to vector<16x160xf32>
    %119 = arith.mulf %118, %117 : vector<16x160xf32>
    %120 = arith.addf %116, %119 : vector<16x160xf32>
    %121 = vector.extract_strided_slice %44 {offsets = [0, 0], sizes = [16, 160], strides = [1, 1]} : vector<16x164xf32> to vector<16x160xf32>
    %cst_34 = arith.constant 0.120078385 : f32
    %122 = vector.broadcast %cst_34 : f32 to vector<16x160xf32>
    %123 = arith.mulf %122, %121 : vector<16x160xf32>
    %124 = vector.extract_strided_slice %44 {offsets = [0, 1], sizes = [16, 160], strides = [1, 1]} : vector<16x164xf32> to vector<16x160xf32>
    %cst_35 = arith.constant 0.233880758 : f32
    %125 = vector.broadcast %cst_35 : f32 to vector<16x160xf32>
    %126 = arith.mulf %125, %124 : vector<16x160xf32>
    %127 = arith.addf %123, %126 : vector<16x160xf32>
    %128 = vector.extract_strided_slice %44 {offsets = [0, 2], sizes = [16, 160], strides = [1, 1]} : vector<16x164xf32> to vector<16x160xf32>
    %cst_36 = arith.constant 0.292081714 : f32
    %129 = vector.broadcast %cst_36 : f32 to vector<16x160xf32>
    %130 = arith.mulf %129, %128 : vector<16x160xf32>
    %131 = arith.addf %127, %130 : vector<16x160xf32>
    %132 = vector.extract_strided_slice %44 {offsets = [0, 3], sizes = [16, 160], strides = [1, 1]} : vector<16x164xf32> to vector<16x160xf32>
    %cst_37 = arith.constant 0.233880758 : f32
    %133 = vector.broadcast %cst_37 : f32 to vector<16x160xf32>
    %134 = arith.mulf %133, %132 : vector<16x160xf32>
    %135 = arith.addf %131, %134 : vector<16x160xf32>
    %136 = vector.extract_strided_slice %44 {offsets = [0, 4], sizes = [16, 160], strides = [1, 1]} : vector<16x164xf32> to vector<16x160xf32>
    %cst_38 = arith.constant 0.120078385 : f32
    %137 = vector.broadcast %cst_38 : f32 to vector<16x160xf32>
    %138 = arith.mulf %137, %136 : vector<16x160xf32>
    %139 = arith.addf %135, %138 : vector<16x160xf32>
    %140 = vector.extract_strided_slice %63 {offsets = [0, 0], sizes = [16, 160], strides = [1, 1]} : vector<16x164xf32> to vector<16x160xf32>
    %cst_39 = arith.constant 0.120078385 : f32
    %141 = vector.broadcast %cst_39 : f32 to vector<16x160xf32>
    %142 = arith.mulf %141, %140 : vector<16x160xf32>
    %143 = vector.extract_strided_slice %63 {offsets = [0, 1], sizes = [16, 160], strides = [1, 1]} : vector<16x164xf32> to vector<16x160xf32>
    %cst_40 = arith.constant 0.233880758 : f32
    %144 = vector.broadcast %cst_40 : f32 to vector<16x160xf32>
    %145 = arith.mulf %144, %143 : vector<16x160xf32>
    %146 = arith.addf %142, %145 : vector<16x160xf32>
    %147 = vector.extract_strided_slice %63 {offsets = [0, 2], sizes = [16, 160], strides = [1, 1]} : vector<16x164xf32> to vector<16x160xf32>
    %cst_41 = arith.constant 0.292081714 : f32
    %148 = vector.broadcast %cst_41 : f32 to vector<16x160xf32>
    %149 = arith.mulf %148, %147 : vector<16x160xf32>
    %150 = arith.addf %146, %149 : vector<16x160xf32>
    %151 = vector.extract_strided_slice %63 {offsets = [0, 3], sizes = [16, 160], strides = [1, 1]} : vector<16x164xf32> to vector<16x160xf32>
    %cst_42 = arith.constant 0.233880758 : f32
    %152 = vector.broadcast %cst_42 : f32 to vector<16x160xf32>
    %153 = arith.mulf %152, %151 : vector<16x160xf32>
    %154 = arith.addf %150, %153 : vector<16x160xf32>
    %155 = vector.extract_strided_slice %63 {offsets = [0, 4], sizes = [16, 160], strides = [1, 1]} : vector<16x164xf32> to vector<16x160xf32>
    %cst_43 = arith.constant 0.120078385 : f32
    %156 = vector.broadcast %cst_43 : f32 to vector<16x160xf32>
    %157 = arith.mulf %156, %155 : vector<16x160xf32>
    %158 = arith.addf %154, %157 : vector<16x160xf32>
    %159 = vector.extract_strided_slice %82 {offsets = [0, 0], sizes = [16, 160], strides = [1, 1]} : vector<16x164xf32> to vector<16x160xf32>
    %cst_44 = arith.constant 0.120078385 : f32
    %160 = vector.broadcast %cst_44 : f32 to vector<16x160xf32>
    %161 = arith.mulf %160, %159 : vector<16x160xf32>
    %162 = vector.extract_strided_slice %82 {offsets = [0, 1], sizes = [16, 160], strides = [1, 1]} : vector<16x164xf32> to vector<16x160xf32>
    %cst_45 = arith.constant 0.233880758 : f32
    %163 = vector.broadcast %cst_45 : f32 to vector<16x160xf32>
    %164 = arith.mulf %163, %162 : vector<16x160xf32>
    %165 = arith.addf %161, %164 : vector<16x160xf32>
    %166 = vector.extract_strided_slice %82 {offsets = [0, 2], sizes = [16, 160], strides = [1, 1]} : vector<16x164xf32> to vector<16x160xf32>
    %cst_46 = arith.constant 0.292081714 : f32
    %167 = vector.broadcast %cst_46 : f32 to vector<16x160xf32>
    %168 = arith.mulf %167, %166 : vector<16x160xf32>
    %169 = arith.addf %165, %168 : vector<16x160xf32>
    %170 = vector.extract_strided_slice %82 {offsets = [0, 3], sizes = [16, 160], strides = [1, 1]} : vector<16x164xf32> to vector<16x160xf32>
    %cst_47 = arith.constant 0.233880758 : f32
    %171 = vector.broadcast %cst_47 : f32 to vector<16x160xf32>
    %172 = arith.mulf %171, %170 : vector<16x160xf32>
    %173 = arith.addf %169, %172 : vector<16x160xf32>
    %174 = vector.extract_strided_slice %82 {offsets = [0, 4], sizes = [16, 160], strides = [1, 1]} : vector<16x164xf32> to vector<16x160xf32>
    %cst_48 = arith.constant 0.120078385 : f32
    %175 = vector.broadcast %cst_48 : f32 to vector<16x160xf32>
    %176 = arith.mulf %175, %174 : vector<16x160xf32>
    %177 = arith.addf %173, %176 : vector<16x160xf32>
    %178 = vector.extract_strided_slice %101 {offsets = [0, 0], sizes = [16, 160], strides = [1, 1]} : vector<16x164xf32> to vector<16x160xf32>
    %cst_49 = arith.constant 0.120078385 : f32
    %179 = vector.broadcast %cst_49 : f32 to vector<16x160xf32>
    %180 = arith.mulf %179, %178 : vector<16x160xf32>
    %181 = vector.extract_strided_slice %101 {offsets = [0, 1], sizes = [16, 160], strides = [1, 1]} : vector<16x164xf32> to vector<16x160xf32>
    %cst_50 = arith.constant 0.233880758 : f32
    %182 = vector.broadcast %cst_50 : f32 to vector<16x160xf32>
    %183 = arith.mulf %182, %181 : vector<16x160xf32>
    %184 = arith.addf %180, %183 : vector<16x160xf32>
    %185 = vector.extract_strided_slice %101 {offsets = [0, 2], sizes = [16, 160], strides = [1, 1]} : vector<16x164xf32> to vector<16x160xf32>
    %cst_51 = arith.constant 0.292081714 : f32
    %186 = vector.broadcast %cst_51 : f32 to vector<16x160xf32>
    %187 = arith.mulf %186, %185 : vector<16x160xf32>
    %188 = arith.addf %184, %187 : vector<16x160xf32>
    %189 = vector.extract_strided_slice %101 {offsets = [0, 3], sizes = [16, 160], strides = [1, 1]} : vector<16x164xf32> to vector<16x160xf32>
    %cst_52 = arith.constant 0.233880758 : f32
    %190 = vector.broadcast %cst_52 : f32 to vector<16x160xf32>
    %191 = arith.mulf %190, %189 : vector<16x160xf32>
    %192 = arith.addf %188, %191 : vector<16x160xf32>
    %193 = vector.extract_strided_slice %101 {offsets = [0, 4], sizes = [16, 160], strides = [1, 1]} : vector<16x164xf32> to vector<16x160xf32>
    %cst_53 = arith.constant 0.120078385 : f32
    %194 = vector.broadcast %cst_53 : f32 to vector<16x160xf32>
    %195 = arith.mulf %194, %193 : vector<16x160xf32>
    %196 = arith.addf %192, %195 : vector<16x160xf32>
    %197 = arith.mulf %120, %120 : vector<16x160xf32>
    %198 = arith.mulf %139, %139 : vector<16x160xf32>
    %199 = arith.mulf %120, %139 : vector<16x160xf32>
    %200 = arith.subf %158, %197 : vector<16x160xf32>
    %201 = arith.subf %177, %198 : vector<16x160xf32>
    %202 = arith.subf %196, %199 : vector<16x160xf32>
    %cst_54 = arith.constant 2.000000e+00 : f32
    %203 = vector.broadcast %cst_54 : f32 to vector<16x160xf32>
    %204 = arith.mulf %203, %199 : vector<16x160xf32>
    %cst_55 = arith.constant 9.99999974E-5 : f32
    %205 = vector.broadcast %cst_55 : f32 to vector<16x160xf32>
    %206 = arith.addf %204, %205 : vector<16x160xf32>
    %cst_56 = arith.constant 2.000000e+00 : f32
    %207 = vector.broadcast %cst_56 : f32 to vector<16x160xf32>
    %208 = arith.mulf %207, %202 : vector<16x160xf32>
    %cst_57 = arith.constant 8.99999984E-4 : f32
    %209 = vector.broadcast %cst_57 : f32 to vector<16x160xf32>
    %210 = arith.addf %208, %209 : vector<16x160xf32>
    %211 = arith.mulf %206, %210 : vector<16x160xf32>
    %212 = arith.addf %197, %198 : vector<16x160xf32>
    %cst_58 = arith.constant 9.99999974E-5 : f32
    %213 = vector.broadcast %cst_58 : f32 to vector<16x160xf32>
    %214 = arith.addf %212, %213 : vector<16x160xf32>
    %215 = arith.addf %200, %201 : vector<16x160xf32>
    %cst_59 = arith.constant 8.99999984E-4 : f32
    %216 = vector.broadcast %cst_59 : f32 to vector<16x160xf32>
    %217 = arith.addf %215, %216 : vector<16x160xf32>
    %218 = arith.mulf %214, %217 : vector<16x160xf32>
    %219 = arith.divf %211, %218 : vector<16x160xf32>
    %cst_60 = arith.constant 1.000000e+00 : f32
    %220 = vector.broadcast %cst_60 : f32 to vector<16x160xf32>
    %221 = arith.subf %220, %219 : vector<16x160xf32>
    %cst_61 = arith.constant 0.000000e+00 : f32
    %cst_62 = arith.constant 1.000000e+00 : f32
    %222 = vector.broadcast %cst_61 : f32 to vector<16x160xf32>
    %223 = arith.maximumf %222, %221 : vector<16x160xf32>
    %224 = vector.broadcast %cst_62 : f32 to vector<16x160xf32>
    %225 = arith.minimumf %224, %223 : vector<16x160xf32>
    %cst_63 = arith.constant 5.000000e-01 : f32
    %226 = vector.broadcast %cst_63 : f32 to vector<16x160xf32>
    %227 = arith.mulf %225, %226 : vector<16x160xf32>
    %228 = tpu.iota {dimensions = array<i32: 1>} : vector<16x160xi32>
    %c20_i32 = arith.constant 20 : i32
    %c0_i32 = arith.constant 0 : i32
    %229 = arith.cmpi eq, %c20_i32, %c0_i32 : i32
    %c1_i32 = arith.constant 1 : i32
    %230 = arith.select %229, %c1_i32, %c20_i32 : i32
    %231 = vector.broadcast %230 : i32 to vector<16x160xi32>
    %232 = arith.remsi %228, %231 : vector<16x160xi32>
    %c0_i32_64 = arith.constant 0 : i32
    %233 = vector.broadcast %c0_i32_64 : i32 to vector<16x160xi32>
    %234 = arith.cmpi ne, %232, %233 : vector<16x160xi32>
    %c0_i32_65 = arith.constant 0 : i32
    %235 = vector.broadcast %c0_i32_65 : i32 to vector<16x160xi32>
    %236 = arith.cmpi slt, %232, %235 : vector<16x160xi32>
    %c0_i32_66 = arith.constant 0 : i32
    %237 = arith.cmpi slt, %230, %c0_i32_66 : i32
    %238 = vector.broadcast %237 : i1 to vector<16x160xi1>
    %239 = vector.broadcast %238 : vector<16x160xi1> to vector<16x160xi1>
    %240 = arith.xori %236, %239 : vector<16x160xi1>
    %241 = arith.andi %240, %234 : vector<16x160xi1>
    %242 = vector.broadcast %230 : i32 to vector<16x160xi32>
    %243 = arith.addi %232, %242 : vector<16x160xi32>
    %244 = arith.select %241, %243, %232 : vector<16x160xi1>, vector<16x160xi32>
    %c16_i32 = arith.constant 16 : i32
    %245 = vector.broadcast %c16_i32 : i32 to vector<16x160xi32>
    %246 = arith.cmpi slt, %244, %245 : vector<16x160xi32>
    %cst_67 = arith.constant 0.000000e+00 : f32
    %247 = vector.broadcast %cst_67 : f32 to vector<16x160xf32>
    %248 = arith.select %246, %227, %247 : vector<16x160xi1>, vector<16x160xf32>
    %249 = vector.shape_cast %248 : vector<16x160xf32> to vector<1x16x160xf32>
    %cst_68 = arith.constant dense<0.000000e+00> : vector<1xf32>
    %250 = vector.multi_reduction <add>, %249, %cst_68 [1, 2] : vector<1x16x160xf32> to vector<1xf32>
    %251 = vector.shape_cast %250 : vector<1xf32> to vector<1x1x1xf32>
    %252 = vector.extract %251[0, 0, 0] : f32 from vector<1x1x1xf32>
    %253 = tpu.iota {dimensions = array<i32: 1>} : vector<1x8x128xi32>
    %254 = tpu.iota {dimensions = array<i32: 2>} : vector<1x8x128xi32>
    %c0_i32_69 = arith.constant 0 : i32
    %255 = vector.broadcast %c0_i32_69 : i32 to vector<1x8x128xi32>
    %256 = arith.cmpi eq, %253, %255 : vector<1x8x128xi32>
    %c0_i32_70 = arith.constant 0 : i32
    %257 = vector.broadcast %c0_i32_70 : i32 to vector<1x8x128xi32>
    %258 = arith.cmpi eq, %254, %257 : vector<1x8x128xi32>
    %259 = arith.andi %256, %258 : vector<1x8x128xi1>
    %cst_71 = arith.constant 0.000000e+00 : f32
    %260 = vector.broadcast %252 : f32 to vector<1x8x128xf32>
    %261 = vector.broadcast %cst_71 : f32 to vector<1x8x128xf32>
    %262 = arith.select %259, %260, %261 : vector<1x8x128xi1>, vector<1x8x128xf32>
    %c0_72 = arith.constant 0 : index
    %c0_73 = arith.constant 0 : index
    %c0_74 = arith.constant 0 : index
    %263 = vector.load %arg3[%c0_72, %c0_73, %c0_74] : memref<1x8x128xf32, #tpu.memory_space<vmem>>, vector<1x8x128xf32>
    tpu.vector_store %arg3[%c0_72, %c0_73, %c0_74], %262 {strides = array<i32>} : memref<1x8x128xf32, #tpu.memory_space<vmem>>, vector<1x8x128xf32>,
    return
  }
  func.func @transform_0(%arg0: i32) -> (i32, i32, i32) {
    %c0_i32 = arith.constant 0 : i32
    %c0_i32_0 = arith.constant 0 : i32
    %c0_i32_1 = arith.constant 0 : i32
    return %arg0, %c0_i32, %c0_i32_0 : i32, i32, i32
  }
  func.func @transform_1(%arg0: i32) -> (i32, i32, i32) {
    %c0_i32 = arith.constant 0 : i32
    %c0_i32_0 = arith.constant 0 : i32
    %c0_i32_1 = arith.constant 0 : i32
    return %arg0, %c0_i32, %c0_i32_0 : i32, i32, i32
  }
  func.func @transform_2(%arg0: i32) -> (i32, i32, i32) {
    %c0_i32 = arith.constant 0 : i32
    %c0_i32_0 = arith.constant 0 : i32
    %c0_i32_1 = arith.constant 0 : i32
    return %arg0, %c0_i32, %c0_i32_0 : i32, i32, i32
  }
}

</mosaic_0001>

<bundles_post_ra>
// kernel: tpu_custom_call.1
= control target key start
LH: loop header
LB: loop body
LE: loop exit
PB: predicated region body
PF: predicated region fallthrough
CT: control target
= control target key end

     0   :  { %vm58_vm0 = vcmask 1046528   ;;  %vm89_vm1 = vcmask 1045504   ;;  %vm108_vm2 = vcmask 1044480   ;;  %vm135_vm3 = vcmask 1043456   ;;  %s2453_s0 = inlined_call_operand.vmem [shape: f32[1,20,164], index: 0, kind: input, shape index: {}]   ;;  %s2454_s1 = inlined_call_operand.vmem [shape: f32[1,20,164], index: 1, kind: input, shape index: {}]   ;;  %s2455_s2 = inlined_call_operand.hbm [shape: f32[1,8,128], index: 2, kind: output, shape index: {}]  }
   0x1   :  { %v1392_v0 = vld [vmem:[%s2453_s0 + $0x10] sm:$0xff]  ;;  %v1397_v1 = vld [vmem:[%s2453_s0 + $0x20] sm:$0xf]  ;;  %v1413_v16 = vld [vmem:[%s2453_s0 + $0x18] sm:$0xff] }
   0x2   :  { %2476 = vst [vmem:[#allocation5_spill] sm:$0xff] %v1397_v1  ;;  %v44_v2 = vmul.f32 0.120078385, %v1392_v0  ;;  %v48_v3 = vmul.f32 0.23388076, %v1392_v0  ;;  %v1408_v12 = vld [vmem:[%s2453_s0] sm:$0xff] }
   0x3   :  { %v50_v4 = vmul.f32 0.23388076, %v1397_v1  ;;  %v79_v5 = vmul.f32 0.2920817, %v1392_v0  ;;  %v81_v6 = vmul.f32 0.2920817, %v1397_v1 }
   0x4   :  { %v127_v7 = vmul.f32 0.120078385, %v1397_v1  ;;  %v60_v8 = vrot.slane %v48_v3, 1  ;;  %v110_v10 = vrot.slane %v48_v3, 3  ;;  %v137_v15 = vrot.slane %v44_v2, 4 }
   0x5   :  { %v65_v9 = vrot.slane %v50_v4, 1  ;;  %v115_v11 = vrot.slane %v50_v4, 3  ;;  %v91_v13 = vrot.slane %v79_v5, 2  ;;  %v96_v14 = vrot.slane %v81_v6, 2  ;;  %v1423_v24 = vld [vmem:[%s2453_s0 + $0x28] sm:$0xf] }
   0x6   :  { %v142_v19 = vrot.slane %v127_v7, 4  ;;  %v46_v22 = vmul.f32 0.23388076, %v1408_v12  ;;  %v77_v23 = vmul.f32 0.2920817, %v1408_v12 }
   0x7   :  { %v66_v17 = vsel %vm58_vm0, %v60_v8, %v65_v9  ;;  %v116_v18 = vsel %vm108_vm2, %v110_v10, %v115_v11  ;;  %v97_v21 = vsel %vm89_vm1, %v91_v13, %v96_v14  ;;  %v42_v26 = vmul.f32 0.120078385, %v1408_v12 }
   0x8   :  { %v75_v20 = vadd.f32 %v66_v17, %v44_v2  ;;  %v143_v25 = vsel %vm135_vm3, %v137_v15, %v142_v19  ;;  %v1428_v27 = vmul.f32 0.120078385, %v1413_v16  ;;  %v49_v28 = vmul.f32 0.23388076, %v1413_v16 }
   0x9   :  { %v59_v30 = vrot.slane %v46_v22, 1  ;;  %v90_v31 = vrot.slane %v77_v23, 2  ;;  %v109_v32 = vrot.slane %v46_v22, 3 }
   0xa   :  { %v106_v29 = vadd.f32 %v97_v21, %v75_v20 }
   0xb   :  { %7 = vsyncpa [#allocation3], 0  ;;  %v136_v33 = vrot.slane %v42_v26, 4  ;;  %v51_v34 = vmul.f32 0.23388076, %v1423_v24  ;;  %v63_v35 = vrot.slane %v49_v28, 1  ;;  %v61_v38 = vsel %vm58_vm0, %v59_v30, %v60_v8 }
   0xc   :  { %v80_v36 = vmul.f32 0.2920817, %v1413_v16  ;;  %v125_v37 = vadd.f32 %v116_v18, %v106_v29  ;;  %v92_v39 = vsel %vm89_vm1, %v90_v31, %v91_v13  ;;  %v111_v40 = vsel %vm108_vm2, %v109_v32, %v110_v10  ;;  %v1443_v49 = vld [vmem:[%s2453_s0 + $0x8] sm:$0xff]  ;;  %s1368_s0 = smov 127   ;;  %v1465_v9 = vld [vmem:[%s2454_s1] sm:$0xff]  ;;  %s1369_s25 = smov 126  }
   0xd   :  { %v73_v41 = vadd.f32 %v61_v38, %v42_v26  ;;  %v67_v42 = vrot.slane %v51_v34, 1  ;;  %v82_v43 = vmul.f32 0.2920817, %v1423_v24  ;;  %v113_v46 = vrot.slane %v49_v28, 3  ;;  %2477 = vst [vmem:[#allocation6_spill] sm:$0xff] %v1443_v49  ;;  %v1502_v32 = vld [vmem:[%s2454_s1 + $0x8] sm:$0xff] }
   0xe   :  { %v94_v44 = vrot.slane %v80_v36, 2  ;;  %v1437_v45 = vadd.f32 %v143_v25, %v125_v37  ;;  %v117_v47 = vrot.slane %v51_v34, 3  ;;  %v128_v48 = vmul.f32 0.120078385, %v1423_v24  ;;  %2478 = vst [vmem:[#allocation7_spill] sm:$0xff] %v1502_v32  ;;  %v1508_v34 = vld [vmem:[%s2454_s1 + $0x18] sm:$0xff] }
   0xf   :  { %v104_v50 = vadd.f32 %v92_v39, %v73_v41  ;;  %v68_v51 = vsel %vm58_vm0, %v63_v35, %v67_v42  ;;  %v98_v52 = vrot.slane %v82_v43, 2  ;;  %v140_v53 = vrot.slane %v1428_v27, 4  ;;  %s1371_s6 = smov 124   ;;  %s1373_s7 = smov [#allocation2]  }
  0x10   :  { %v1448_v54 = vmul.f32 0.23388076, %v1437_v45  ;;  %v138_v55 = vsel %vm135_vm3, %v136_v33, %v137_v15  ;;  %v76_v56 = vadd.f32 %v68_v51, %v1428_v27  ;;  %v144_v57 = vrot.slane %v128_v48, 4  ;;  %v1475_v15 = vld [vmem:[%s2454_s1 + $0x10] sm:$0xff]  ;;  %s1315_s8 = sshll.u32 %s1373_s7, 4  ;;  %s1317_s11 = sshll.u32 %s2455_s2, 4  ;;  %s1316_s8 = int_to_ptr.vmem [resolvable:$true] %s1315_s8  ;;  %s1318_s11 = int_to_ptr.hbm [resolvable:$true] %s1317_s11 }
  0x11   :  { %v123_v58 = vadd.f32 %v111_v40, %v104_v50  ;;  %v99_v59 = vsel %vm89_vm1, %v94_v44, %v98_v52  ;;  %v118_v60 = vsel %vm108_vm2, %v113_v46, %v117_v47  ;;  %v47_v61 = vmul.f32 0.23388076, %v1443_v49 }
  0x12   :  { %602 = vrot.lane.b32.xlu1 %v1448_v54, %s1368_s0  ;;  %v107_v62 = vadd.f32 %v99_v59, %v76_v56  ;;  %v43_v63 = vmul.f32 0.120078385, %v1443_v49  ;;  %v78_v2 = vmul.f32 0.2920817, %v1443_v49  ;;  %v145_v4 = vsel %vm135_vm3, %v140_v53, %v144_v57 }
  0x13   :  { %v1459_v3 = vadd.f32 %v138_v55, %v123_v58  ;;  %v62_v5 = vrot.slane %v47_v61, 1  ;;  %v112_v6 = vrot.slane %v47_v61, 3  ;;  %v158_v21 = vmul.f32 0.23388076, %v1465_v9 }
  0x14   :  { %v126_v7 = vadd.f32 %v118_v60, %v107_v62  ;;  %v93_v8 = vrot.slane %v78_v2, 2  ;;  %v139_v14 = vrot.slane %v43_v63, 4  ;;  %v1489_v25 = vmul.f32 0.23388076, %v1475_v15 }
  0x15   :  { %v617_v10 = vmul.f32 0.2920817, %v1459_v3  ;;  %v1469_v11 = vmul.f32 0.23388076, %v1459_v3  ;;  %v64_v13 = vsel %vm58_vm0, %v62_v5, %v63_v35  ;;  %v114_v20 = vsel %vm108_vm2, %v112_v6, %v113_v46  ;;  %v1529_v46 = vld [vmem:[%s2454_s1 + $0x28] sm:$0xf] }
  0x16   :  { %v1477_v17 = vadd.f32 %v145_v4, %v126_v7  ;;  %v74_v18 = vadd.f32 %v64_v13, %v43_v63  ;;  %v95_v19 = vsel %vm89_vm1, %v93_v8, %v94_v44  ;;  %v141_v26 = vsel %vm135_vm3, %v139_v14, %v140_v53  ;;  %2479 = vst [vmem:[#allocation8_spill] sm:$0xff] %v1529_v46 }
  0x17   :  { %625 = vrot.lane.b32.xlu2 %v617_v10, %s1369_s25  ;;  %598 = vrot.lane.b32.xlu0 %v1469_v11, %s1368_s0  ;;  %v170_v27 = vrot.slane %v158_v21, 1  ;;  %v188_v28 = vmul.f32 0.2920817, %v1465_v9  ;;  %v1494_v29 = vmul.f32 0.2920817, %v1475_v15  ;;  %v171_v31 = vrot.slane %v1489_v25, 1 }
  0x18   :  { %v1486_v22 = vmul.f32 0.23388076, %v1477_v17  ;;  %v105_v23 = vadd.f32 %v95_v19, %v74_v18  ;;  %v619_v33 = vmul.f32 0.2920817, %v1437_v45  ;;  %v620_v36 = vmul.f32 0.2920817, %v1477_v17 }
  0x19   :  { %v154_v37 = vmul.f32 0.120078385, %v1465_v9  ;;  %v1515_v38 = vmul.f32 0.120078385, %v1475_v15  ;;  %v172_v39 = vsel %vm58_vm0, %v170_v27, %v171_v31  ;;  %v200_v40 = vrot.slane %v188_v28, 2 }
  0x1a   :  { %604 = vrot.lane.b32.xlu1 %v1486_v22, %s1368_s0  ;;  %v124_v30 = vadd.f32 %v114_v20, %v105_v23  ;;  %v201_v41 = vrot.slane %v1494_v29, 2  ;;  %v159_v42 = vmul.f32 0.23388076, %v1502_v32  ;;  %v218_v47 = vrot.slane %v158_v21, 3  ;;  %v1552_v18 = vld [vmem:[%s2454_s1 + $0x20] sm:$0xf] }
  0x1b   :  { %v161_v48 = vmul.f32 0.23388076, %v1508_v34  ;;  %v189_v51 = vmul.f32 0.2920817, %v1502_v32  ;;  %v184_v52 = vadd.f32 %v172_v39, %v154_v37  ;;  %v219_v53 = vrot.slane %v1489_v25, 3  ;;  %2480 = vst [vmem:[#allocation9_spill] sm:$0xff] %v1552_v18 }
  0x1c   :  { %v1510_v35 = vadd.f32 %v141_v26, %v124_v30  ;;  %v173_v50 = vrot.slane %v159_v42, 1  ;;  %v155_v55 = vmul.f32 0.120078385, %v1502_v32  ;;  %v191_v56 = vmul.f32 0.2920817, %v1508_v34  ;;  %s1370_s1 = smov 125  }
  0x1d   :  { %v202_v57 = vsel %vm89_vm1, %v200_v40, %v201_v41  ;;  %v157_v58 = vmul.f32 0.120078385, %v1508_v34  ;;  %v174_v59 = vrot.slane %v161_v48, 1  ;;  %v203_v60 = vrot.slane %v189_v51, 2 }
  0x1e   :  { %v618_v43 = vmul.f32 0.2920817, %v1510_v35  ;;  %v1524_v44 = vmul.f32 0.23388076, %v1510_v35  ;;  %v204_v61 = vrot.slane %v191_v56, 2  ;;  %v221_v62 = vrot.slane %v159_v42, 3 }
  0x1f   :  { %v222_v63 = vrot.slane %v161_v48, 3  ;;  %v163_v2 = vmul.f32 0.23388076, %v1529_v46  ;;  %v244_v4 = vrot.slane %v154_v37, 4  ;;  %v245_v5 = vrot.slane %v1515_v38, 4 }
  0x20   :  { %627 = vrot.lane.b32.xlu2 %v618_v43, %s1369_s25  ;;  %600 = vrot.lane.b32.xlu0 %v1524_v44, %s1368_s0  ;;  %v175_v6 = vsel %vm58_vm0, %v173_v50, %v174_v59  ;;  %v193_v7 = vmul.f32 0.2920817, %v1529_v46  ;;  %v214_v8 = vadd.f32 %v202_v57, %v184_v52  ;;  %v205_v13 = vsel %vm89_vm1, %v203_v60, %v204_v61 }
  0x21   :  { %v185_v10 = vadd.f32 %v175_v6, %v155_v55  ;;  %v178_v14 = vrot.slane %v163_v2, 1  ;;  %v220_v19 = vsel %vm108_vm2, %v218_v47, %v219_v53  ;;  %v247_v20 = vrot.slane %v155_v55, 4 }
  0x22   :  { %631 = vrot.lane.b32.xlu1 %v620_v36, %s1369_s25  ;;  %v248_v21 = vrot.slane %v157_v58, 4  ;;  %v208_v23 = vrot.slane %v193_v7, 2  ;;  %v223_v27 = vsel %vm108_vm2, %v221_v62, %v222_v63  ;;  %v226_v30 = vrot.slane %v163_v2, 3 }
  0x23   :  { %v215_v26 = vadd.f32 %v205_v13, %v185_v10  ;;  %v179_v28 = vsel %vm58_vm0, %v174_v59, %v178_v14  ;;  %v237_v39 = vmul.f32 0.120078385, %v1529_v46  ;;  %v162_v40 = vmul.f32 0.23388076, %v1552_v18 }
  0x24   :  { %v187_v36 = vadd.f32 %v179_v28, %v157_v58  ;;  %v209_v37 = vsel %vm89_vm1, %v204_v61, %v208_v23  ;;  %v1566_v42 = vmul.f32 0.120078385, %v1437_v45  ;;  %v232_v43 = vadd.f32 %v220_v19, %v214_v8 }
  0x25   :  { %v192_v47 = vmul.f32 0.2920817, %v1552_v18  ;;  %v246_v48 = vsel %vm135_vm3, %v244_v4, %v245_v5  ;;  %v176_v50 = vrot.slane %v162_v40, 1  ;;  %v25_v51 = vmul.f32 %v1443_v49, %v1443_v49 }
  0x26   :  { %v27_v52 = vmul.f32 %v1413_v16, %v1413_v16  ;;  %v217_v45 = vadd.f32 %v209_v37, %v187_v36  ;;  %v236_v55 = vmul.f32 0.120078385, %v1552_v18  ;;  %v249_v56 = vsel %vm135_vm3, %v247_v20, %v248_v21 }
  0x27   :  { %v227_v57 = vsel %vm108_vm2, %v222_v63, %v226_v30  ;;  %v252_v58 = vrot.slane %v237_v39, 4  ;;  %v177_v59 = vsel %vm58_vm0, %v171_v31, %v176_v50  ;;  %v1585_v60 = vmul.f32 0.120078385, %v1510_v35 }
  0x28   :  { %644 = vrot.lane.b32.xlu2 %v1469_v11, %s1370_s1  ;;  %629 = vrot.lane.b32.xlu0 %v619_v33, %s1369_s25  ;;  %v233_v11 = vadd.f32 %v223_v27, %v215_v26  ;;  %v206_v33 = vrot.slane %v192_v47, 2  ;;  %v1588_v61 = vmul.f32 0.120078385, %v1459_v3  ;;  %v186_v62 = vadd.f32 %v177_v59, %v1515_v38 }
  0x29   :  { %v224_v63 = vrot.slane %v162_v40, 3  ;;  %v1596_v4 = vmul.f32 0.23388076, %v25_v51  ;;  %v1598_v6 = vmul.f32 0.23388076, %v27_v52  ;;  %v235_v3 = vadd.f32 %v227_v57, %v217_v45 }
  0x2a   :  { %648 = vrot.lane.b32.xlu1 %v1448_v54, %s1370_s1  ;;  %v1590_v54 = vadd.f32 %v246_v48, %v232_v43  ;;  %v207_v2 = vsel %vm89_vm1, %v201_v41, %v206_v33  ;;  %v1600_v31 = vadd.f32 %v249_v56, %v233_v11  ;;  %v1603_v35 = vmul.f32 0.120078385, %v1477_v17 }
  0x2b   :  { %v250_v7 = vrot.slane %v236_v55, 4  ;;  %v253_v8 = vsel %vm135_vm3, %v248_v21, %v252_v58  ;;  %v263_v10 = vmul.f32 0.120078385, %v25_v51  ;;  %v1606_v13 = vmul.f32 0.120078385, %v27_v52 }
  0x2c   :  { %v297_v29 = vmul.f32 0.2920817, %v25_v51  ;;  %v216_v41 = vadd.f32 %v207_v2, %v186_v62  ;;  %v281_v14 = vrot.slane %v1596_v4, 1  ;;  %v282_v17 = vrot.slane %v1598_v6, 1 }
  0x2d   :  { %v1614_v19 = vmul.f32 0.2920817, %v27_v52  ;;  %v1617_v20 = vmul.f32 0.23388076, %v1590_v54  ;;  %v1620_v21 = vmul.f32 0.2920817, %v1590_v54  ;;  %v1632_v26 = vadd.f32 %v253_v8, %v235_v3 }
  0x2e   :  { %v1630_v23 = vmul.f32 0.23388076, %v1600_v31  ;;  %v251_v27 = vsel %vm135_vm3, %v245_v5, %v250_v7  ;;  %v355_v28 = vrot.slane %v263_v10, 4  ;;  %v2458_v25 = vrot.slane %v1606_v13, 4 }
  0x2f   :  { %v283_v39 = vsel %vm58_vm0, %v281_v14, %v282_v17  ;;  %v311_v40 = vrot.slane %v297_v29, 2  ;;  %v2464_v43 = vrot.slane %v1614_v19, 2  ;;  %v30_v48 = vmul.f32 %v1465_v9, %v1465_v9 }
  0x30   :  { %650 = vrot.lane.b32.xlu2 %v1486_v22, %s1370_s1  ;;  %646 = vrot.lane.b32.xlu0 %v1524_v44, %s1370_s1  ;;  %v225_v22 = vsel %vm108_vm2, %v219_v53, %v224_v63  ;;  %v24_v44 = vmul.f32 %v1408_v12, %v1408_v12  ;;  %v26_v53 = vmul.f32 %v1392_v0, %v1392_v0  ;;  %v329_v50 = vrot.slane %v1596_v4, 3 }
  0x31   :  { %v234_v37 = vadd.f32 %v225_v22, %v216_v41  ;;  %v32_v56 = vmul.f32 %v1475_v15, %v1475_v15  ;;  %v293_v58 = vadd.f32 %v283_v39, %v263_v10  ;;  %v2461_v59 = vrot.slane %v1598_v6, 3 }
  0x32   :  { %669 = vrot.lane.b32.xlu1 %v1585_v60, %s1371_s6  ;;  %v266_v30 = vmul.f32 0.23388076, %v24_v44  ;;  %v296_v36 = vmul.f32 0.2920817, %v24_v44  ;;  %v262_v47 = vmul.f32 0.120078385, %v24_v44  ;;  %v313_v2 = vsel %vm89_vm1, %v311_v40, %v2464_v43 }
  0x33   :  { %v1644_v38 = vmul.f32 0.23388076, %v26_v53  ;;  %v1649_v51 = vmul.f32 0.120078385, %v26_v53  ;;  %v1651_v52 = vmul.f32 0.2920817, %v26_v53  ;;  %v1661_v57 = vadd.f32 %v251_v27, %v234_v37 }
  0x34   :  { %v278_v5 = vrot.slane %v266_v30, 1  ;;  %v308_v11 = vrot.slane %v296_v36, 2  ;;  %v326_v33 = vrot.slane %v266_v30, 3  ;;  %v352_v4 = vrot.slane %v262_v47, 4 }
  0x35   :  { %v2463_v45 = vrot.slane %v1644_v38, 1  ;;  %v2457_v55 = vrot.slane %v1644_v38, 3  ;;  %v2459_v62 = vrot.slane %v1651_v52, 2  ;;  %v1671_v3 = vmul.f32 0.23388076, %v30_v48 }
  0x36   :  { %v2456_v10 = vrot.slane %v1649_v51, 4  ;;  %v1679_v29 = vmul.f32 0.23388076, %v32_v56  ;;  %v1682_v41 = vmul.f32 0.23388076, %v1632_v26  ;;  %v323_v27 = vadd.f32 %v313_v2, %v293_v58 }
  0x37   :  { %v280_v63 = vsel %vm58_vm0, %v278_v5, %v2463_v45  ;;  %v310_v8 = vsel %vm89_vm1, %v308_v11, %v2459_v62  ;;  %v328_v14 = vsel %vm108_vm2, %v326_v33, %v2457_v55  ;;  %v404_v22 = vmul.f32 0.2920817, %v30_v48 }
  0x38   :  { %671 = vrot.lane.b32.xlu2 %v1566_v42, %s1371_s6  ;;  %667 = vrot.lane.b32.xlu0 %v1588_v61, %s1371_s6  ;;  %v292_v7 = vadd.f32 %v280_v63, %v262_v47  ;;  %v1687_v44 = vmul.f32 0.2920817, %v32_v56  ;;  %v331_v53 = vsel %vm108_vm2, %v329_v50, %v2461_v59  ;;  %v357_v30 = vsel %vm135_vm3, %v355_v28, %v2458_v25 }
  0x39   :  { %v1696_v37 = vmul.f32 0.23388076, %v1661_v57  ;;  %v386_v39 = vrot.slane %v1671_v3, 1  ;;  %v2460_v40 = vrot.slane %v1679_v29, 1  ;;  %v31_v47 = vmul.f32 %v1502_v32, %v1502_v32 }
  0x3a   :  { %698 = vrot.lane.b32.xlu1 %v1617_v20, %s1368_s0  ;;  %v322_v36 = vadd.f32 %v310_v8, %v292_v7  ;;  %v354_v50 = vsel %vm135_vm3, %v352_v4, %v2456_v10  ;;  %v370_v11 = vmul.f32 0.120078385, %v30_v48  ;;  %v33_v28 = vmul.f32 %v1508_v34, %v1508_v34 }
  0x3b   :  { %v1707_v33 = vmul.f32 0.120078385, %v32_v56  ;;  %v416_v58 = vrot.slane %v404_v22, 2  ;;  %v2470_v2 = vrot.slane %v1687_v44, 2  ;;  %v434_v63 = vrot.slane %v1671_v3, 3 }
  0x3c   :  { %v340_v5 = vadd.f32 %v328_v14, %v322_v36  ;;  %v341_v7 = vadd.f32 %v331_v53, %v323_v27  ;;  %v1715_v8 = vmul.f32 0.120078385, %v33_v28  ;;  %v375_v48 = vmul.f32 0.23388076, %v31_v47 }
  0x3d   :  { %v1717_v4 = vmul.f32 0.23388076, %v33_v28  ;;  %v388_v56 = vsel %vm58_vm0, %v386_v39, %v2460_v40  ;;  %v371_v14 = vmul.f32 0.120078385, %v31_v47  ;;  %v405_v22 = vmul.f32 0.2920817, %v31_v47 }
  0x3e   :  { %v1722_v36 = vmul.f32 0.2920817, %v33_v28  ;;  %v1726_v3 = vadd.f32 %v354_v50, %v340_v5  ;;  %v389_v10 = vrot.slane %v375_v48, 1  ;;  %v437_v53 = vrot.slane %v375_v48, 3 }
  0x3f   :  { %v2462_v27 = vrot.slane %v1717_v4, 1  ;;  %v2469_v55 = vrot.slane %v1679_v29, 3  ;;  %v419_v25 = vrot.slane %v405_v22, 2  ;;  %v2465_v39 = vrot.slane %v1717_v4, 3 }
  0x40   :  { %700 = vrot.lane.b32.xlu2 %v1630_v23, %s1368_s0  ;;  %673 = vrot.lane.b32.xlu0 %v1603_v35, %s1371_s6  ;;  %v2467_v62 = vrot.slane %v1722_v36, 2  ;;  %v400_v40 = vadd.f32 %v388_v56, %v370_v11  ;;  %v463_v28 = vrot.slane %v371_v14, 4  ;;  %v2466_v5 = vrot.slane %v1715_v8, 4 }
  0x41   :  { %v391_v47 = vsel %vm58_vm0, %v389_v10, %v2462_v27  ;;  %v418_v50 = vsel %vm89_vm1, %v416_v58, %v2470_v2  ;;  %v28_v59 = vmul.f32 %v1397_v1, %v1397_v1  ;;  %v1745_v56 = vmul.f32 0.23388076, %v1726_v3 }
  0x42   :  { %704 = vrot.lane.b32.xlu1 %v1682_v41, %s1368_s0  ;;  %v401_v48 = vadd.f32 %v391_v47, %v371_v14  ;;  %v421_v22 = vsel %vm89_vm1, %v419_v25, %v2467_v62  ;;  %v439_v10 = vsel %vm108_vm2, %v437_v53, %v2465_v39  ;;  %v1750_v27 = vadd.f32 %v357_v30, %v341_v7 }
  0x43   :  { %v460_v45 = vrot.slane %v370_v11, 4  ;;  %v29_v58 = vmul.f32 %v1423_v24, %v1423_v24  ;;  %v430_v25 = vadd.f32 %v418_v50, %v400_v40  ;;  %v436_v14 = vsel %vm108_vm2, %v434_v63, %v2469_v55 }
  0x44   :  { %v431_v43 = vadd.f32 %v421_v22, %v401_v48  ;;  %v2468_v53 = vrot.slane %v1707_v33, 4  ;;  %v465_v30 = vsel %vm135_vm3, %v463_v28, %v2466_v5  ;;  %v270_v7 = vmul.f32 0.23388076, %v28_v59 }
  0x45   :  { %v271_v47 = vmul.f32 0.23388076, %v29_v58  ;;  %v301_v48 = vmul.f32 0.2920817, %v29_v58  ;;  %v1770_v22 = vmul.f32 0.23388076, %v1750_v27  ;;  %v448_v39 = vadd.f32 %v436_v14, %v430_v25 }
  0x46   :  { %v449_v11 = vadd.f32 %v439_v10, %v431_v43  ;;  %v717_v63 = vmul.f32 0.2920817, %v1600_v31  ;;  %v462_v43 = vsel %vm135_vm3, %v460_v45, %v2468_v53  ;;  %v284_v28 = vrot.slane %v270_v7, 1 }
  0x47   :  { %v286_v40 = vrot.slane %v271_v47, 1  ;;  %v316_v50 = vrot.slane %v301_v48, 2  ;;  %v300_v10 = vmul.f32 0.2920817, %v28_v59  ;;  %v345_v62 = vmul.f32 0.120078385, %v29_v58 }
  0x48   :  { %724 = vrot.lane.b32.xlu2 %v1620_v21, %s1369_s25  ;;  %702 = vrot.lane.b32.xlu0 %v1696_v37, %s1368_s0  ;;  %v1767_v21 = vadd.f32 %v465_v30, %v449_v11  ;;  %v35_v30 = vmul.f32 %v1529_v46, %v1529_v46  ;;  %v2481_v25 = vrot.slane %v1614_v19, 2  ;;  %v334_v45 = vrot.slane %v271_v47, 3 }
  0x49   :  { %v287_v5 = vsel %vm58_vm0, %v282_v17, %v286_v40  ;;  %v34_v53 = vmul.f32 %v1552_v18, %v1552_v18  ;;  %v1793_v17 = vadd.f32 %v462_v43, %v448_v39  ;;  %v2482_v40 = vrot.slane %v1644_v38, 1 }
  0x4a   :  { %794 = vrot.lane.b32.xlu1 %v1745_v56, %s1368_s0  ;;  %v1782_v11 = vmul.f32 0.23388076, %v1767_v21  ;;  %v295_v48 = vadd.f32 %v287_v5, %v1606_v13  ;;  %v317_v14 = vsel %vm89_vm1, %v2481_v25, %v316_v50  ;;  %v314_v58 = vrot.slane %v300_v10, 2 }
  0x4b   :  { %v285_v5 = vsel %vm58_vm0, %v2482_v40, %v284_v28  ;;  %v379_v55 = vmul.f32 0.23388076, %v35_v30  ;;  %v378_v19 = vmul.f32 0.23388076, %v34_v53  ;;  %v360_v50 = vrot.slane %v345_v62, 4 }
  0x4c   :  { %v325_v47 = vadd.f32 %v317_v14, %v295_v48  ;;  %v408_v25 = vmul.f32 0.2920817, %v34_v53  ;;  %v718_v2 = vmul.f32 0.2920817, %v1661_v57  ;;  %v344_v32 = vmul.f32 0.120078385, %v28_v59 }
  0x4d   :  { %v1805_v43 = vmul.f32 0.23388076, %v1793_v17  ;;  %v294_v28 = vadd.f32 %v285_v5, %v1649_v51  ;;  %v392_v10 = vrot.slane %v378_v19, 1  ;;  %v2484_v49 = vrot.slane %v1651_v52, 2 }
  0x4e   :  { %v422_v40 = vrot.slane %v408_v25, 2  ;;  %v332_v62 = vrot.slane %v270_v7, 3  ;;  %v394_v14 = vrot.slane %v379_v55, 1  ;;  %v409_v18 = vmul.f32 0.2920817, %v35_v30 }
  0x4f   :  { %v315_v48 = vsel %vm89_vm1, %v2484_v49, %v314_v58  ;;  %v2485_v59 = vrot.slane %v1606_v13, 4  ;;  %v2487_v25 = vrot.slane %v1687_v44, 2  ;;  %v440_v46 = vrot.slane %v378_v19, 3 }
  0x50   :  { %796 = vrot.lane.b32.xlu2 %v1770_v22, %s1368_s0  ;;  %726 = vrot.lane.b32.xlu0 %v717_v63, %s1369_s25  ;;  %v2483_v63 = vrot.slane %v1598_v6, 3  ;;  %v452_v49 = vmul.f32 0.120078385, %v34_v53  ;;  %v324_v13 = vadd.f32 %v315_v48, %v294_v28  ;;  %v2488_v7 = vrot.slane %v1644_v38, 3 }
  0x51   :  { %v361_v6 = vsel %vm135_vm3, %v2485_v59, %v360_v50  ;;  %v423_v52 = vsel %vm89_vm1, %v2487_v25, %v422_v40  ;;  %v2489_v50 = vrot.slane %v1717_v4, 1  ;;  %v424_v44 = vrot.slane %v409_v18, 2 }
  0x52   :  { %892 = vrot.lane.b32.xlu1 %v1782_v11, %s1368_s0  ;;  %v335_v39 = vsel %vm108_vm2, %v2483_v63, %v334_v45  ;;  %v2486_v45 = vrot.slane %v1679_v29, 1  ;;  %v333_v58 = vsel %vm108_vm2, %v2488_v7, %v332_v62  ;;  %v2490_v19 = vrot.slane %v1679_v29, 3 }
  0x53   :  { %v343_v1 = vadd.f32 %v335_v39, %v325_v47  ;;  %v358_v47 = vrot.slane %v344_v32, 4  ;;  %v395_v39 = vsel %vm58_vm0, %v2489_v50, %v394_v14  ;;  %v719_v38 = vmul.f32 0.2920817, %v1632_v26 }
  0x54   :  { %v393_v63 = vsel %vm58_vm0, %v2486_v45, %v392_v10  ;;  %v441_v28 = vsel %vm108_vm2, %v2490_v19, %v440_v46  ;;  %v466_v10 = vrot.slane %v452_v49, 4  ;;  %v342_v40 = vadd.f32 %v333_v58, %v324_v13 }
  0x55   :  { %v402_v5 = vadd.f32 %v393_v63, %v1707_v33  ;;  %v1832_v53 = vadd.f32 %v361_v6, %v343_v1  ;;  %v403_v32 = vadd.f32 %v395_v39, %v1715_v8  ;;  %v2491_v48 = vrot.slane %v1649_v51, 4 }
  0x56   :  { %v2492_v62 = vrot.slane %v1722_v36, 2  ;;  %v453_v14 = vmul.f32 0.120078385, %v35_v30  ;;  %v2493_v59 = vrot.slane %v1707_v33, 4  ;;  %v2494_v45 = vrot.slane %v1717_v4, 3 }
  0x57   :  { %v359_v18 = vsel %vm135_vm3, %v2491_v48, %v358_v47  ;;  %v1846_v29 = vmul.f32 0.23388076, %v1832_v53  ;;  %v2495_v25 = vrot.slane %v1715_v8, 4  ;;  %v813_v13 = vmul.f32 0.2920817, %v1750_v27 }
  0x58   :  { %728 = vrot.lane.b32.xlu2 %v718_v2, %s1369_s25  ;;  %890 = vrot.lane.b32.xlu0 %v1805_v43, %s1368_s0  ;;  %v432_v2 = vadd.f32 %v423_v52, %v402_v5  ;;  %v425_v1 = vsel %vm89_vm1, %v2492_v62, %v424_v44  ;;  %v467_v6 = vsel %vm135_vm3, %v2493_v59, %v466_v10  ;;  %v468_v30 = vrot.slane %v453_v14, 4 }
  0x59   :  { %v1854_v51 = vadd.f32 %v359_v18, %v342_v40  ;;  %v433_v36 = vadd.f32 %v425_v1, %v403_v32  ;;  %v909_v8 = vmul.f32 0.2920817, %v1767_v21  ;;  %v908_v47 = vmul.f32 0.2920817, %v1793_v17 }
  0x5a   :  { %742 = vrot.lane.b32.xlu1 %v1617_v20, %s1370_s1  ;;  %v442_v20 = vrot.slane %v379_v55, 3  ;;  %v450_v46 = vadd.f32 %v441_v28, %v432_v2  ;;  %v469_v52 = vsel %vm135_vm3, %v2495_v25, %v468_v30  ;;  %v1891_v50 = vmul.f32 0.120078385, %v1590_v54 }
  0x5b   :  { %v1864_v33 = vmul.f32 0.23388076, %v1854_v51  ;;  %vm633_vm4 = vcmask 1031168   ;;  %v687_v2 = vmul.f32 0.120078385, %v1600_v31  ;;  %vm606_vm5 = vcmask 1039360  }
  0x5c   :  { %v443_v55 = vsel %vm108_vm2, %v2494_v45, %v442_v20  ;;  %v1861_v63 = vadd.f32 %v467_v6, %v450_v46  ;;  %v815_v19 = vmul.f32 0.2920817, %v1832_v53  ;;  %v1927_v46 = vmul.f32 0.120078385, %v1661_v57 }
  0x5d   :  { %v451_v5 = vadd.f32 %v443_v55, %v433_v36  ;;  %v38_v59 = vmul.f32 %v1475_v15, %v1392_v0  ;;  %vm652_vm6 = vcmask 1022976   ;;  %v1951_v45 = vmul.f32 0.120078385, %v1632_v26 }
  0x5e   :  { %v1871_v4 = vmul.f32 0.23388076, %v1861_v63  ;;  %v910_v10 = vmul.f32 0.2920817, %v1861_v63  ;;  %vm675_vm7 = vcmask 1014784  }
  0x5f   :  { %v1876_v49 = vadd.f32 %v469_v52, %v451_v5  ;;  %v1955_v25 = vmul.f32 0.2920817, %v38_v59  ;;  %v783_v52 = vmul.f32 0.120078385, %v1750_v27  ;;  %v1974_v27 = vmul.f32 0.120078385, %v1726_v3 }
  0x60   :  { %744 = vrot.lane.b32.xlu2 %v1630_v23, %s1370_s1  ;;  %730 = vrot.lane.b32.xlu0 %v719_v38, %s1369_s25  ;;  %v812_v23 = vmul.f32 0.2920817, %v1726_v3  ;;  %v1988_v3 = vmul.f32 0.120078385, %v1793_v17  ;;  %v2499_v17 = vld [vmem:[#allocation6_spill] sm:$0xff] }
  0x61   :  { %v1882_v7 = vmul.f32 0.23388076, %v1876_v49 }
  0x62   :  { %800 = vrot.lane.b32.xlu1 %v1846_v29, %s1368_s0 }
  0x68   :  { %798 = vrot.lane.b32.xlu0 %v1864_v33, %s1368_s0  ;;  %820 = vrot.lane.b32.xlu2 %v812_v23, %s1369_s25 }
  0x6a   :  { %894 = vrot.lane.b32.xlu1 %v1871_v4, %s1368_s0 }
  0x70   :  { %822 = vrot.lane.b32.xlu0 %v813_v13, %s1369_s25  ;;  %896 = vrot.lane.b32.xlu2 %v1882_v7, %s1368_s0  ;;  %v39_v13 = vmul.f32 %v1508_v34, %v1413_v16  ;;  %v525_v16 = vrot.slane %v1955_v25, 2 }
  0x71   :  { %v626_v58 = vpop.permute.xlu2 %625 }
  0x72   :  { %918 = vrot.lane.b32.xlu1 %v909_v8, %s1369_s25  ;;  %v2496_v8 = vld [vmem:[#allocation8_spill] sm:$0xff] }
  0x73   :  { %v1964_v26 = vmul.f32 %v2496_v8, %v1423_v24 }
  0x78   :  { %916 = vrot.lane.b32.xlu0 %v908_v47, %s1369_s25  ;;  %746 = vrot.lane.b32.xlu2 %v1696_v37, %s1370_s1  ;;  %v814_v37 = vmul.f32 0.2920817, %v1854_v51 }
  0x7a   :  { %v628_v39 = vpop.permute.xlu2 %627  ;;  %764 = vrot.lane.b32.xlu1 %v1891_v50, %s1371_s6 }
  0x7b   :  { %v634_v44 = vsel %vm633_vm4, %v626_v58, %v628_v39 }
  0x80   :  { %748 = vrot.lane.b32.xlu0 %v1682_v41, %s1370_s1  ;;  %766 = vrot.lane.b32.xlu2 %v687_v2, %s1371_s6  ;;  %v911_v41 = vmul.f32 0.2920817, %v1876_v49 }
  0x82   :  { %v1904_v54 = vpop.permute.xlu2 %644  ;;  %826 = vrot.lane.b32.xlu1 %v815_v19, %s1369_s25 }
  0x84   :  { %v603_v28 = vpop.permute.xlu1 %602 }
  0x88   :  { %824 = vrot.lane.b32.xlu0 %v814_v37, %s1369_s25  ;;  %838 = vrot.lane.b32.xlu2 %v1745_v56, %s1370_s1 }
  0x89   :  { %v599_v31 = vpop.permute.xlu0 %598 }
  0x8a   :  { %v651_v38 = vpop.permute.xlu2 %650  ;;  %920 = vrot.lane.b32.xlu1 %v910_v10, %s1369_s25 }
  0x8c   :  { %v605_v40 = vpop.permute.xlu1 %604 }
  0x8d   :  { %v608_v32 = vsel %vm606_vm5, %v603_v28, %v605_v40  ;;  %v616_v56 = vadd.f32 %v605_v40, %v1603_v35 }
  0x8e   :  { %v615_v57 = vadd.f32 %v608_v32, %v1566_v42 }
  0x90   :  { %840 = vrot.lane.b32.xlu0 %v1770_v22, %s1370_s1  ;;  %922 = vrot.lane.b32.xlu2 %v911_v41, %s1369_s25  ;;  %v36_v22 = vmul.f32 %v1465_v9, %v1408_v12 }
  0x92   :  { %v1918_v48 = vpop.permute.xlu2 %671  ;;  %v601_v18 = vpop.permute.xlu0 %600  ;;  %936 = vrot.lane.b32.xlu1 %v1782_v11, %s1370_s1  ;;  %v512_v5 = vmul.f32 0.2920817, %v36_v22  ;;  %v478_v58 = vmul.f32 0.120078385, %v36_v22 }
  0x93   :  { %v607_v62 = vsel %vm606_vm5, %v599_v31, %v601_v18  ;;  %v614_v1 = vadd.f32 %v601_v18, %v1585_v60  ;;  %v482_v60 = vmul.f32 0.23388076, %v36_v22  ;;  %v1990_v31 = vmul.f32 0.120078385, %v38_v59  ;;  %v2497_v18 = vld [vmem:[#allocation5_spill] sm:$0xff] }
  0x94   :  { %v613_v20 = vadd.f32 %v607_v62, %v1588_v61  ;;  %v632_v14 = vpop.permute.xlu1 %631  ;;  %v1939_v61 = vmul.f32 0.23388076, %v38_v59  ;;  %v2500_v62 = vld [vmem:[#allocation7_spill] sm:$0xff]  ;;  %v515_v22 = vmul.f32 0.2920817, %v39_v13 }
  0x95   :  { %v643_v6 = vadd.f32 %v632_v14, %v616_v56  ;;  %v641_v11 = vadd.f32 %v628_v39, %v614_v1  ;;  %v494_v30 = vrot.slane %v482_v60, 1  ;;  %v524_v39 = vrot.slane %v512_v5, 2 }
  0x96   :  { %v640_v36 = vadd.f32 %v634_v44, %v613_v20  ;;  %v495_v42 = vrot.slane %v1939_v61, 1  ;;  %v1980_v44 = vmul.f32 0.23388076, %v39_v13  ;;  %v543_v41 = vrot.slane %v1939_v61, 3 }
  0x97   :  { %v1933_v35 = vadd.f32 %v651_v38, %v643_v6  ;;  %v526_v32 = vsel %vm89_vm1, %v524_v39, %v525_v16  ;;  %v37_v1 = vmul.f32 %v2500_v62, %v2499_v17  ;;  %v517_v59 = vmul.f32 0.2920817, %v1964_v26 }
  0x98   :  { %934 = vrot.lane.b32.xlu0 %v1805_v43, %s1370_s1  ;;  %768 = vrot.lane.b32.xlu2 %v1927_v46, %s1371_s6  ;;  %v496_v47 = vsel %vm58_vm0, %v494_v30, %v495_v42  ;;  %v498_v20 = vrot.slane %v1980_v44, 1  ;;  %v2008_v6 = vmul.f32 0.120078385, %v1767_v21  ;;  %v528_v5 = vrot.slane %v515_v22, 2 }
  0x99   :  { %v508_v37 = vadd.f32 %v496_v47, %v478_v58  ;;  %v532_v8 = vrot.slane %v517_v59, 2  ;;  %v561_v62 = vmul.f32 0.120078385, %v1964_v26 }
  0x9a   :  { %v1942_v12 = vpop.permute.xlu2 %700  ;;  %v630_v9 = vpop.permute.xlu0 %629  ;;  %842 = vrot.lane.b32.xlu1 %v1864_v33, %s1370_s1 }
  0x9b   :  { %v1947_v0 = vadd.f32 %v1942_v12, %v687_v2  ;;  %v635_v15 = vsel %vm633_vm4, %v630_v9, %v632_v14  ;;  %v569_v9 = vrot.slane %v1990_v31, 4 }
  0x9c   :  { %v642_v43 = vadd.f32 %v635_v15, %v615_v57  ;;  %v649_v55 = vpop.permute.xlu1 %648  ;;  %v568_v57 = vrot.slane %v478_v58, 4  ;;  %v513_v15 = vmul.f32 0.2920817, %v37_v1  ;;  %v479_v58 = vmul.f32 0.120078385, %v37_v1 }
  0x9d   :  { %v654_v23 = vsel %vm652_vm6, %v649_v55, %v651_v38  ;;  %v542_v38 = vrot.slane %v482_v60, 3  ;;  %v538_v60 = vadd.f32 %v526_v32, %v508_v37  ;;  %v546_v32 = vrot.slane %v1980_v44, 3 }
  0x9e   :  { %v1957_v33 = vadd.f32 %v654_v23, %v642_v43  ;;  %v481_v43 = vmul.f32 0.120078385, %v39_v13 }
  0x9f   :  { %v544_v21 = vsel %vm108_vm2, %v542_v38, %v543_v41  ;;  %v570_v38 = vsel %vm135_vm3, %v568_v57, %v569_v9 }
  0xa0   :  { %770 = vrot.lane.b32.xlu0 %v1951_v45, %s1371_s6  ;;  %844 = vrot.lane.b32.xlu2 %v1846_v29, %s1370_s1  ;;  %v1983_v29 = vmul.f32 0.23388076, %v1964_v26  ;;  %v556_v37 = vadd.f32 %v544_v21, %v538_v60  ;;  %v576_v60 = vrot.slane %v561_v62, 4 }
  0xa2   :  { %v1977_v34 = vpop.permute.xlu2 %724  ;;  %v647_v24 = vpop.permute.xlu0 %646  ;;  %862 = vrot.lane.b32.xlu1 %v783_v52, %s1371_s6  ;;  %v502_v14 = vrot.slane %v1983_v29, 1 }
  0xa3   :  { %v653_v2 = vsel %vm652_vm6, %v1904_v54, %v647_v24  ;;  %v660_v19 = vadd.f32 %v647_v24, %v641_v11  ;;  %v2498_v54 = vld [vmem:[#allocation9_spill] sm:$0xff]  ;;  %v2011_v11 = vmul.f32 0.120078385, %v1832_v53  ;;  %v527_v24 = vrot.slane %v513_v15, 2 }
  0xa4   :  { %v659_v28 = vadd.f32 %v653_v2, %v640_v36  ;;  %v670_v10 = vpop.permute.xlu1 %669  ;;  %v2000_v56 = vmul.f32 %v2498_v54, %v2497_v18  ;;  %v483_v36 = vmul.f32 0.23388076, %v37_v1 }
  0xa5   :  { %v1993_v40 = vadd.f32 %v670_v10, %v660_v19  ;;  %v529_v44 = vsel %vm89_vm1, %v527_v24, %v528_v5 }
  0xa6   :  { %v2022_v53 = vmul.f32 0.23388076, %v2000_v56  ;;  %v497_v55 = vrot.slane %v483_v36, 1  ;;  %v516_v54 = vmul.f32 0.2920817, %v2000_v56 }
  0xa8   :  { %860 = vrot.lane.b32.xlu0 %v1974_v27, %s1371_s6  ;;  %938 = vrot.lane.b32.xlu2 %v1871_v4, %s1370_s1  ;;  %v503_v4 = vsel %vm58_vm0, %v498_v20, %v502_v14  ;;  %v499_v39 = vsel %vm58_vm0, %v497_v55, %v498_v20  ;;  %v533_v20 = vsel %vm89_vm1, %v528_v5, %v532_v8  ;;  %v545_v14 = vrot.slane %v483_v36, 3 }
  0xa9   :  { %v511_v17 = vadd.f32 %v503_v4, %v481_v43  ;;  %v509_v1 = vadd.f32 %v499_v39, %v479_v58  ;;  %v2075_v4 = vmul.f32 0.120078385, %v1854_v51  ;;  %v2079_v8 = vmul.f32 0.120078385, %v1861_v63 }
  0xaa   :  { %v2024_v30 = vpop.permute.xlu2 %796  ;;  %v668_v23 = vpop.permute.xlu0 %667  ;;  %956 = vrot.lane.b32.xlu1 %v1988_v3, %s1371_s6  ;;  %v547_v55 = vsel %vm108_vm2, %v545_v14, %v546_v32 }
  0xab   :  { %v2030_v47 = vadd.f32 %v2024_v30, %v783_v52  ;;  %v676_v13 = vsel %vm675_vm7, %v668_v23, %v670_v10  ;;  %v550_v52 = vrot.slane %v1983_v29, 3  ;;  %v500_v10 = vrot.slane %v2022_v53, 1 }
  0xac   :  { %v2034_v2 = vadd.f32 %v676_v13, %v659_v28  ;;  %v699_v19 = vpop.permute.xlu1 %698  ;;  %v530_v29 = vrot.slane %v516_v54, 2  ;;  %v541_v36 = vadd.f32 %v533_v20, %v511_v17  ;;  %v539_v57 = vadd.f32 %v529_v44, %v509_v1 }
  0xad   :  { %v706_v18 = vsel %vm606_vm5, %v699_v19, %v1942_v12  ;;  %v2055_v12 = vadd.f32 %v570_v38, %v556_v37  ;;  %v501_v26 = vsel %vm58_vm0, %v495_v42, %v500_v10  ;;  %v571_v42 = vrot.slane %v479_v58, 4 }
  0xae   :  { %v2046_v28 = vadd.f32 %v706_v18, %v1891_v50  ;;  %v551_v50 = vsel %vm108_vm2, %v546_v32, %v550_v52  ;;  %v548_v58 = vrot.slane %v2022_v53, 3  ;;  %v557_v39 = vadd.f32 %v547_v55, %v539_v57 }
  0xaf   :  { %v2090_v51 = vmul.f32 0.23388076, %v2055_v12  ;;  %v559_v13 = vadd.f32 %v551_v50, %v541_v36  ;;  %v881_v18 = vmul.f32 0.120078385, %v1876_v49  ;;  %v1004_v44 = vmul.f32 0.2920817, %v2055_v12 }
  0xb0   :  { %940 = vrot.lane.b32.xlu0 %v1882_v7, %s1370_s1  ;;  %958 = vrot.lane.b32.xlu2 %v2008_v6, %s1371_s6  ;;  %v572_v7 = vrot.slane %v481_v43, 4  ;;  %v510_v43 = vadd.f32 %v501_v26, %v1990_v31  ;;  %v549_v25 = vsel %vm108_vm2, %v543_v41, %v548_v58  ;;  %v2147_v58 = vmul.f32 0.120078385, %v2055_v12 }
  0xb1   :  { %v2160_v12 = vmul.f32 %v1993_v40, %v1993_v40 }
  0xb2   :  { %v2061_v22 = vpop.permute.xlu2 %728  ;;  %v674_v59 = vpop.permute.xlu0 %673  ;;  %866 = vrot.lane.b32.xlu1 %v2011_v11, %s1371_s6  ;;  %v577_v24 = vsel %vm135_vm3, %v572_v7, %v576_v60  ;;  %v573_v63 = vsel %vm135_vm3, %v571_v42, %v572_v7 }
  0xb3   :  { %v677_v15 = vsel %vm675_vm7, %v1918_v48, %v674_v59  ;;  %v2068_v21 = vadd.f32 %v674_v59, %v1933_v35  ;;  %v531_v35 = vsel %vm89_vm1, %v525_v16, %v530_v29  ;;  %v2103_v19 = vadd.f32 %v577_v24, %v559_v13 }
  0xb4   :  { %v2072_v23 = vadd.f32 %v677_v15, %v1957_v33  ;;  %v705_v5 = vpop.permute.xlu1 %704  ;;  %v560_v33 = vmul.f32 0.120078385, %v2000_v56  ;;  %v583_v37 = vadd.f32 %v573_v63, %v557_v39 }
  0xb5   :  { %v2082_v48 = vadd.f32 %v705_v5, %v1951_v45  ;;  %v540_v45 = vadd.f32 %v531_v35, %v510_v43  ;;  %v981_v62 = vmul.f32 0.23388076, %v2103_v19 }
  0xb6   :  { %v574_v16 = vrot.slane %v560_v33, 4  ;;  %v979_v61 = vmul.f32 0.23388076, %v583_v37  ;;  %v1005_v36 = vmul.f32 0.2920817, %v583_v37 }
  0xb7   :  { %v558_v10 = vadd.f32 %v549_v25, %v540_v45 }
  0xb8   :  { %864 = vrot.lane.b32.xlu0 %v2075_v4, %s1371_s6  ;;  %960 = vrot.lane.b32.xlu2 %v2079_v8, %s1371_s6  ;;  %v575_v54 = vsel %vm135_vm3, %v569_v9, %v574_v16  ;;  %v2170_v16 = vmul.f32 0.120078385, %v2103_v19 }
  0xba   :  { %v745_v56 = vpop.permute.xlu2 %744  ;;  %v703_v53 = vpop.permute.xlu0 %702  ;;  %986 = vrot.lane.b32.xlu1 %v2090_v51, %s1368_s0 }
  0xbb   :  { %v707_v38 = vsel %vm606_vm5, %v703_v53, %v705_v5 }
  0xbc   :  { %v714_v32 = vadd.f32 %v707_v38, %v1927_v46  ;;  %v795_v52 = vpop.permute.xlu1 %794  ;;  %v2118_v46 = vadd.f32 %v575_v54, %v558_v10 }
  0xbd   :  { %v802_v41 = vsel %vm606_vm5, %v795_v52, %v2024_v30 }
  0xbe   :  { %v2114_v17 = vadd.f32 %v802_v41, %v1974_v27  ;;  %v980_v30 = vmul.f32 0.23388076, %v2118_v46  ;;  %v1006_v26 = vmul.f32 0.2920817, %v2118_v46 }
  0xc0   :  { %962 = vrot.lane.b32.xlu0 %v881_v18, %s1371_s6  ;;  %988 = vrot.lane.b32.xlu2 %v979_v61, %s1368_s0 }
  0xc2   :  { %v727_v49 = vpop.permute.xlu0 %726  ;;  %v821_v1 = vpop.permute.xlu2 %820  ;;  %992 = vrot.lane.b32.xlu1 %v981_v62, %s1368_s0 }
  0xc3   :  { %v732_v31 = vsel %vm633_vm4, %v1977_v34, %v727_v49  ;;  %v739_v9 = vadd.f32 %v727_v49, %v1947_v0 }
  0xc4   :  { %v738_v27 = vadd.f32 %v732_v31, %v2046_v28  ;;  %v893_v20 = vpop.permute.xlu1 %892 }
  0xc5   :  { %v905_v14 = vadd.f32 %v893_v20, %v2008_v6  ;;  %v757_v50 = vadd.f32 %v745_v56, %v739_v9  ;;  %v1007_v6 = vmul.f32 0.2920817, %v2103_v19 }
  0xc8   :  { %990 = vrot.lane.b32.xlu0 %v980_v30, %s1368_s0  ;;  %1012 = vrot.lane.b32.xlu2 %v1004_v44, %s1369_s25 }
  0xca   :  { %v891_v29 = vpop.permute.xlu0 %890  ;;  %v897_v34 = vpop.permute.xlu2 %896  ;;  %1016 = vrot.lane.b32.xlu1 %v1006_v26, %s1369_s25 }
  0xcb   :  { %v2133_v0 = vadd.f32 %v897_v34, %v881_v18  ;;  %v898_v28 = vsel %vm606_vm5, %v891_v29, %v893_v20 }
  0xcc   :  { %v904_v59 = vadd.f32 %v898_v28, %v1988_v3  ;;  %v743_v7 = vpop.permute.xlu1 %742 }
  0xcd   :  { %v750_v60 = vsel %vm652_vm6, %v743_v7, %v745_v56 }
  0xce   :  { %v756_v57 = vadd.f32 %v750_v60, %v738_v27 }
  0xd0   :  { %1014 = vrot.lane.b32.xlu0 %v1005_v36, %s1369_s25  ;;  %1018 = vrot.lane.b32.xlu2 %v1007_v6, %s1369_s25 }
  0xd2   :  { %v731_v15 = vpop.permute.xlu0 %730  ;;  %v747_v55 = vpop.permute.xlu2 %746  ;;  %1032 = vrot.lane.b32.xlu1 %v979_v61, %s1370_s1 }
  0xd3   :  { %v733_v42 = vsel %vm633_vm4, %v2061_v22, %v731_v15  ;;  %v741_v3 = vadd.f32 %v731_v15, %v2082_v48 }
  0xd4   :  { %v740_v5 = vadd.f32 %v733_v42, %v714_v32  ;;  %v801_v43 = vpop.permute.xlu1 %800 }
  0xd5   :  { %v811_v35 = vadd.f32 %v801_v43, %v2011_v11  ;;  %v2156_v11 = vmul.f32 0.120078385, %v583_v37  ;;  %v2185_v37 = vmul.f32 0.120078385, %v2118_v46 }
  0xd8   :  { %1030 = vrot.lane.b32.xlu0 %v2090_v51, %s1370_s1  ;;  %1034 = vrot.lane.b32.xlu2 %v980_v30, %s1370_s1 }
  0xda   :  { %v799_v33 = vpop.permute.xlu0 %798  ;;  %v767_v13 = vpop.permute.xlu2 %766  ;;  %1052 = vrot.lane.b32.xlu1 %v2147_v58, %s1371_s6 }
  0xdb   :  { %v779_v22 = vadd.f32 %v767_v13, %v757_v50  ;;  %v803_v48 = vsel %vm606_vm5, %v799_v33, %v801_v43 }
  0xdc   :  { %v810_v39 = vadd.f32 %v803_v48, %v2075_v4  ;;  %v895_v24 = vpop.permute.xlu1 %894 }
  0xdd   :  { %v2162_v51 = vmul.f32 %v779_v22, %v779_v22  ;;  %v2165_v63 = vmul.f32 %v779_v22, %v1993_v40  ;;  %v899_v45 = vsel %vm606_vm5, %v895_v24, %v897_v34  ;;  %v2213_v24 = vmul.f32 %v2068_v21, %v2068_v21 }
  0xde   :  { %v906_v25 = vadd.f32 %v899_v45, %v2079_v8 }
  0xdf   :  { %v2174_v4 = vadd.f32 %v2162_v51, %v2160_v12 }
  0xe0   :  { %1036 = vrot.lane.b32.xlu0 %v981_v62, %s1370_s1  ;;  %1054 = vrot.lane.b32.xlu2 %v2156_v11, %s1371_s6 }
  0xe2   :  { %v823_v56 = vpop.permute.xlu0 %822  ;;  %v839_v53 = vpop.permute.xlu2 %838  ;;  %1058 = vrot.lane.b32.xlu1 %v2170_v16, %s1371_s6 }
  0xe3   :  { %v828_v40 = vsel %vm633_vm4, %v821_v1, %v823_v56  ;;  %v835_v8 = vadd.f32 %v823_v56, %v2030_v47 }
  0xe4   :  { %v834_v19 = vadd.f32 %v828_v40, %v2114_v17  ;;  %v919_v38 = vpop.permute.xlu1 %918  ;;  %v1070_v17 = vmul.f32 %v2034_v2, %v2034_v2 }
  0xe5   :  { %v931_v32 = vadd.f32 %v919_v38, %v905_v14 }
  0xe8   :  { %1056 = vrot.lane.b32.xlu0 %v2185_v37, %s1371_s6 }
  0xea   :  { %v917_v18 = vpop.permute.xlu0 %916  ;;  %v2189_v52 = vpop.permute.xlu2 %922 }
  0xeb   :  { %v924_v10 = vsel %vm633_vm4, %v917_v18, %v919_v38 }
  0xec   :  { %v930_v61 = vadd.f32 %v924_v10, %v904_v59  ;;  %v765_v41 = vpop.permute.xlu1 %764  ;;  %v1119_v10 = vadd.f32 0.0001, %v2174_v4 }
  0xed   :  { %v772_v54 = vsel %vm675_vm7, %v765_v41, %v767_v13 }
  0xee   :  { %v778_v47 = vadd.f32 %v772_v54, %v756_v57 }
  0xf0   :  { %v1074_v62 = vmul.f32 %v778_v47, %v778_v47  ;;  %v2196_v46 = vmul.f32 %v778_v47, %v2034_v2 }
  0xf2   :  { %v749_v49 = vpop.permute.xlu0 %748  ;;  %v1114_v1 = vadd.f32 %v1074_v62, %v1070_v17  ;;  %v769_v31 = vpop.permute.xlu2 %768 }
  0xf3   :  { %v751_v9 = vsel %vm652_vm6, %v747_v55, %v749_v49  ;;  %v759_v27 = vadd.f32 %v749_v49, %v741_v3 }
  0xf4   :  { %v758_v30 = vadd.f32 %v751_v9, %v740_v5  ;;  %v827_v20 = vpop.permute.xlu1 %826  ;;  %v1118_v4 = vadd.f32 0.0001, %v1114_v1 }
  0xf5   :  { %v837_v44 = vadd.f32 %v827_v20, %v811_v35 }
  0xfa   :  { %v825_v14 = vpop.permute.xlu0 %824  ;;  %v845_v50 = vpop.permute.xlu2 %844 }
  0xfb   :  { %v829_v26 = vsel %vm633_vm4, %v825_v14, %v827_v20 }
  0xfc   :  { %v836_v29 = vadd.f32 %v829_v26, %v810_v39  ;;  %v921_v34 = vpop.permute.xlu1 %920 }
  0xfd   :  { %v925_v28 = vsel %vm633_vm4, %v921_v34, %v2189_v52  ;;  %v855_v34 = vadd.f32 %v845_v50, %v837_v44 }
  0xfe   :  { %v2202_v2 = vadd.f32 %v925_v28, %v906_v25  ;;  %v1210_v28 = vlaneseq }
 0x102   :  { %v841_v59 = vpop.permute.xlu0 %840  ;;  %v2204_v36 = vpop.permute.xlu2 %938 }
 0x103   :  { %v846_v7 = vsel %vm652_vm6, %v839_v53, %v841_v59  ;;  %v853_v6 = vadd.f32 %v841_v59, %v835_v8 }
 0x104   :  { %v852_v60 = vadd.f32 %v846_v7, %v834_v19  ;;  %v937_v57 = vpop.permute.xlu1 %936 }
 0x105   :  { %v949_v15 = vadd.f32 %v937_v57, %v931_v32 }
 0x10a   :  { %v935_v55 = vpop.permute.xlu0 %934  ;;  %v959_v42 = vpop.permute.xlu2 %958 }
 0x10b   :  { %v971_v3 = vadd.f32 %v959_v42, %v949_v15  ;;  %v942_v38 = vsel %vm652_vm6, %v935_v55, %v937_v57 }
 0x10c   :  { %v843_v5 = vpop.permute.xlu1 %842  ;;  %v948_v54 = vadd.f32 %v942_v38, %v930_v61  ;;  %v2247_v61 = vand.u32 127, %v1210_v28 }
 0x10d   :  { %v1087_v43 = vsub.f32 %v971_v3, %v2162_v51  ;;  %v2222_v51 = vmul.f32 %v2072_v23, %v2072_v23  ;;  %v847_v15 = vsel %vm652_vm6, %v843_v5, %v845_v50 }
 0x10e   :  { %v854_v1 = vadd.f32 %v847_v15, %v836_v29  ;;  %v933_v29 = vadd.f32 %v2189_v52, %v2133_v0 }
 0x112   :  { %v771_v35 = vpop.permute.xlu0 %770  ;;  %v2208_v33 = vpop.permute.xlu2 %960 }
 0x113   :  { %v773_v13 = vsel %vm675_vm7, %v769_v31, %v771_v35  ;;  %v781_v22 = vadd.f32 %v771_v35, %v759_v27 }
 0x114   :  { %v780_v48 = vadd.f32 %v773_v13, %v758_v30  ;;  %v863_v39 = vpop.permute.xlu1 %862 }
 0x115   :  { %v2215_v45 = vmul.f32 %v781_v22, %v781_v22  ;;  %v2218_v25 = vmul.f32 %v781_v22, %v2068_v21  ;;  %v875_v56 = vadd.f32 %v863_v39, %v853_v6 }
 0x116   :  { %v2224_v53 = vmul.f32 %v780_v48, %v780_v48  ;;  %v2227_v40 = vmul.f32 %v780_v48, %v2072_v23 }
 0x117   :  { %v2231_v8 = vadd.f32 %v2215_v45, %v2213_v24  ;;  %v1083_v19 = vsub.f32 %v875_v56, %v2160_v12 }
 0x118   :  { %v2236_v21 = vadd.f32 %v2224_v53, %v2222_v51 }
 0x119   :  { %v1123_v32 = vadd.f32 %v1087_v43, %v1083_v19 }
 0x11a   :  { %v861_v18 = vpop.permute.xlu0 %860  ;;  %v2241_v31 = vpop.permute.xlu2 %988 }
 0x11b   :  { %v1127_v41 = vadd.f32 0.0009, %v1123_v32  ;;  %v868_v23 = vsel %vm675_vm7, %v861_v18, %v863_v39 }
 0x11c   :  { %v874_v47 = vadd.f32 %v868_v23, %v852_v60  ;;  %v957_v49 = vpop.permute.xlu1 %956 }
 0x11d   :  { %v2243_v9 = vmul.f32 %v1127_v41, %v1119_v10  ;;  %v964_v12 = vsel %vm675_vm7, %v957_v49, %v959_v42 }
 0x11e   :  { %v1082_v27 = vsub.f32 %v874_v47, %v1070_v17  ;;  %v970_v30 = vadd.f32 %v964_v12, %v948_v54  ;;  %v1372_v12 = vmov 0  }
 0x11f   :  { %1334 = vrcp.f32 %v2243_v9  ;;  %vm1154_vm12 = vweird.f32 %v2243_v9 }
 0x120   :  { %v1086_v20 = vsub.f32 %v970_v30, %v1074_v62  ;;  %v2256_v62 = vadd.s32 128, %v2247_v61 }
 0x122   :  { %v1122_v14 = vadd.f32 %v1086_v20, %v1082_v27  ;;  %v941_v26 = vpop.permute.xlu0 %940  ;;  %v2251_v57 = vpop.permute.xlu2 %1012  ;;  %v1245_v44 = vand.u32 65535, %v2256_v62  ;;  %v1246_v13 = vshrl.u32 %v2256_v62, 16 }
 0x123   :  { %v943_v50 = vsel %vm652_vm6, %v2204_v36, %v941_v26  ;;  %v951_v19 = vadd.f32 %v941_v26, %v933_v29 }
 0x124   :  { %v1126_v59 = vadd.f32 0.0009, %v1122_v14  ;;  %v867_v7 = vpop.permute.xlu1 %866  ;;  %v2260_v3 = vmul.u32 52428, %v1245_v44  ;;  %v1248_v22 = vmul.u32 52429, %v1245_v44  ;;  %v950_v56 = vadd.f32 %v943_v50, %v2202_v2 }
 0x125   :  { %v877_v6 = vadd.f32 %v867_v7, %v855_v34  ;;  %v2276_v38 = vmul.u32 52429, %v1246_v13  ;;  %v1251_v18 = vmul.u32 52428, %v1246_v13  ;;  %v1121_v44 = vadd.f32 0.0001, %v2231_v8 }
 0x126   :  { %v2249_v60 = vmul.f32 %v1126_v59, %v1118_v4  ;;  %v1252_v48 = vshll.u32 %v2260_v3, 16 }
 0x127   :  { %v1085_v17 = vsub.f32 %v877_v6, %v2213_v24  ;;  %v1216_v24 = vand.u32 65535, %v2247_v61  ;;  %v1254_v49 = vshll.u32 %v2276_v38, 16 }
 0x128   :  { %vm1256_vm8 = vc.u32 %v1248_v22, %v1252_v48  ;;  %1336 = vrcp.f32 %v2249_v60  ;;  %v1258_v30 = vadd.s32 %v1252_v48, %v1248_v22  ;;  %vm1139_vm0 = vweird.f32 %v2249_v60 }
 0x129   :  { %v1220_v32 = vmul.u32 52428, %v1216_v24  ;;  %v1219_v23 = vmul.u32 52429, %v1216_v24  ;;  %v1257_v27 = vsel %vm1256_vm8, 1, %v1372_v12 }
 0x12a   :  { %v865_v55 = vpop.permute.xlu0 %864  ;;  %v2271_v39 = vpop.permute.xlu2 %1018  ;;  %v1259_v6 = vadd.s32 %v1257_v27, %v1251_v18  ;;  %vm1260_vm10 = vc.u32 %v1258_v30, %v1254_v49 }
 0x12b   :  { %v869_v42 = vsel %vm675_vm7, %v865_v55, %v867_v7  ;;  %v1223_v54 = vshll.u32 %v1220_v32, 16  ;;  %v1224_v24 = vshrl.u32 %v1220_v32, 16 }
 0x12c   :  { %v876_v43 = vadd.f32 %v869_v42, %v854_v1  ;;  %v2262_v35 = vpop.permute.xlu1 %986 }
 0x12d   :  { %vm1227_vm9 = vc.u32 %v1219_v23, %v1223_v54  ;;  %v1229_v7 = vadd.s32 %v1223_v54, %v1219_v23  ;;  %v994_v27 = vsel %vm606_vm5, %v2262_v35, %v2241_v31 }
 0x12e   :  { %v1084_v5 = vsub.f32 %v876_v43, %v2222_v51  ;;  %v1217_v51 = vshrl.u32 %v2247_v61, 16  ;;  %v1228_v4 = vsel %vm1227_vm9, 1, %v1372_v12  ;;  %v1000_v35 = vadd.f32 %v994_v27, %v2147_v58 }
 0x130   :  { %v1221_v2 = vmul.u32 52429, %v1217_v51  ;;  %v1222_v14 = vmul.u32 52428, %v1217_v51  ;;  %v1095_v51 = vmul.f32 2.0, %v2165_v63 }
 0x132   :  { %v963_v36 = vpop.permute.xlu0 %962  ;;  %v1225_v26 = vshll.u32 %v1221_v2, 16  ;;  %v2295_v42 = vpop.permute.xlu2 %1034  ;;  %v1230_v43 = vadd.s32 %v1228_v4, %v1222_v14  ;;  %v1226_v23 = vshrl.u32 %v1221_v2, 16  ;;  %v2321_v14 = vmul.f32 2.0, %v2218_v25 }
 0x133   :  { %v965_v0 = vsel %vm675_vm7, %v2208_v33, %v963_v36  ;;  %v973_v52 = vadd.f32 %v963_v36, %v951_v19  ;;  %v2287_v33 = vpop.eup %1334  ;;  %v1255_v19 = vshrl.u32 %v2276_v38, 16  ;;  %v1099_v38 = vadd.f32 0.0001, %v1095_v51 }
 0x134   :  { %v972_v10 = vadd.f32 %v965_v0, %v950_v56  ;;  %v2282_v41 = vpop.permute.xlu1 %992  ;;  %v2289_v15 = vpop.eup %1336  ;;  %vm1231_vm11 = vc.u32 %v1229_v7, %v1225_v26  ;;  %v1150_v48 = vmul.f32 %v2287_v33, %v2243_v9  ;;  %v1001_v0 = vadd.f32 %v2241_v31, %v2156_v11 }
 0x135   :  { %v1089_v47 = vsub.f32 %v973_v52, %v2215_v45  ;;  %v1120_v45 = vadd.f32 0.0001, %v2236_v21  ;;  %v1232_v50 = vsel %vm1231_vm11, 1, %v1372_v12  ;;  %v1253_v21 = vshrl.u32 %v2260_v3, 16 }
 0x136   :  { %v1088_v20 = vsub.f32 %v972_v10, %v2224_v53  ;;  %v1135_v29 = vmul.f32 %v2289_v15, %v2249_v60  ;;  %v1234_v56 = vadd.s32 %v1232_v50, %v1230_v43  ;;  %v1151_v3 = vsub.f32 1.0, %v1150_v48 }
 0x137   :  { %v1125_v34 = vadd.f32 %v1089_v47, %v1085_v17  ;;  %v1261_v17 = vsel %vm1260_vm10, 1, %v1372_v12  ;;  %v1094_v52 = vmul.f32 2.0, %v2196_v46  ;;  %vm1155_vm13 = vweird.f32 %v2287_v33 }
 0x138   :  { %v1124_v59 = vadd.f32 %v1088_v20, %v1084_v5  ;;  %v1263_v8 = vadd.s32 %v1261_v17, %v1259_v6  ;;  %v1136_v10 = vsub.f32 1.0, %v1135_v29  ;;  %v1235_v54 = vadd.s32 %v1234_v56, %v1224_v24  ;;  %vm2346_vm15 = vmor %vm1154_vm12, %vm1155_vm13 }
 0x139   :  { %v1129_v1 = vadd.f32 0.0009, %v1125_v34  ;;  %v1152_v11 = vmul.f32 %v2287_v33, %v1151_v3  ;;  %v2318_v20 = vadd.f32 0.0001, %v1094_v52  ;;  %v1158_v7 = vand.u32 2147483647, %v2243_v9 }
 0x13a   :  { %v1128_v55 = vadd.f32 0.0009, %v1124_v59  ;;  %v2293_v53 = vpop.permute.xlu0 %990  ;;  %v1264_v36 = vadd.s32 %v1263_v8, %v1253_v21  ;;  %v1055_v12 = vpop.permute.xlu2 %1054  ;;  %v1137_v2 = vmul.f32 %v2289_v15, %v1136_v10  ;;  %v1236_v26 = vadd.s32 %v1235_v54, %v1226_v23 }
 0x13b   :  { %v2297_v13 = vmul.f32 %v1129_v1, %v1121_v44  ;;  %v1160_v6 = vand.u32 2147483648, %v2243_v9  ;;  %v1153_v44 = vadd.f32 %v2287_v33, %v1152_v11  ;;  %vm1140_vm14 = vweird.f32 %v2289_v15 }
 0x13c   :  { %v2299_v5 = vmul.f32 %v1128_v55, %v1120_v45  ;;  %v2301_v22 = vpop.permute.xlu1 %1016  ;;  %v1265_v32 = vadd.s32 %v1264_v36, %v1255_v19  ;;  %v1138_v55 = vadd.f32 %v2289_v15, %v1137_v2  ;;  %v1237_v43 = vshrl.u32 %v1236_v26, 4  ;;  %vm2360_vm1 = vmor %vm1139_vm0, %vm1140_vm14 }
 0x13d   :  { %1338 = vrcp.f32 %v2297_v13  ;;  %v1145_v21 = vand.u32 2147483648, %v2249_v60  ;;  %v1161_v29 = vor.u32 1.1754944e-38, %v1160_v6  ;;  %v1143_v56 = vand.u32 2147483647, %v2249_v60 }
 0x13e   :  { %v1266_v31 = vshrl.u32 %v1265_v32, 4  ;;  %1340 = vrcp.f32 %v2299_v5  ;;  %v1003_v19 = vadd.f32 %v2282_v41, %v2170_v16  ;;  %v1157_v51 = vsel %vm2346_vm15, %v2287_v33, %v1153_v44 }
 0x13f   :  { %v1142_v60 = vsel %vm2360_vm1, %v2289_v15, %v1138_v55  ;;  %v1238_v16 = vmul.u32 20, %v1237_v43  ;;  %vm1159_vm2 = vcmp.eq.f32.partialorder %v1158_v7, 8.507059e+37  ;;  %v1146_v33 = vor.u32 1.1754944e-38, %v1145_v21 }
 0x140   :  { %v1267_v8 = vmul.u32 20, %v1266_v31  ;;  %v2371_v54 = vmul.f32 2.0, %v2227_v40  ;;  %vm1144_vm3 = vcmp.eq.f32.partialorder %v1143_v56, 8.507059e+37  ;;  %v995_v15 = vsel %vm606_vm5, %v2293_v53, %v2282_v41 }
 0x141   :  { %v1147_v27 = vsel %vm1144_vm3, %v1146_v33, %v1142_v60  ;;  %v1239_v2 = vsub.s32 %v2247_v61, %v1238_v16  ;;  %v1021_v41 = vsel %vm633_vm4, %v2301_v22, %v2271_v39  ;;  %v1190_v31 = vand.u32 2147483648, %v2297_v13 }
 0x142   :  { %v1015_v18 = vpop.permute.xlu0 %1014  ;;  %v1268_v23 = vsub.s32 %v2256_v62, %v1267_v8  ;;  %v1101_v55 = vadd.f32 0.0001, %v2321_v14  ;;  %v1175_v60 = vand.u32 2147483648, %v2299_v5  ;;  %vm1287_vm1 = vcmask 261120  }
 0x143   :  { %v1027_v47 = vadd.f32 %v1015_v18, %v1001_v0  ;;  %v2324_v34 = vpop.eup %1338  ;;  %v1020_v4 = vsel %vm633_vm4, %v2251_v57, %v1015_v18  ;;  %vm1271_vm10 = vcmp.ne.s32.totalorder %v1239_v2, 0  ;;  %vm1273_vm11 = vcmp.lt.s32.totalorder %v1239_v2, 0 }
 0x144   :  { %v1033_v49 = vpop.permute.xlu1 %1032  ;;  %v1026_v57 = vadd.f32 %v1020_v4, %v1000_v35  ;;  %v1180_v58 = vmul.f32 %v2324_v34, %v2297_v13  ;;  %v2367_v18 = vpop.eup %1340  ;;  %vm1272_vm8 = vcmp.ne.s32.totalorder %v1268_v23, 0  ;;  %vm1274_vm9 = vcmp.lt.s32.totalorder %v1268_v23, 0  ;;  %vm2401_vm13 = vmand %vm1273_vm11, %vm1271_vm10 }
 0x145   :  { %v1045_v30 = vadd.f32 %v1033_v49, %v1027_v47  ;;  %v1162_v47 = vsel %vm1159_vm2, %v1161_v29, %v1157_v51  ;;  %v1165_v62 = vmul.f32 %v2367_v18, %v2299_v5  ;;  %v1002_v4 = vadd.f32 %v995_v15, %v2185_v37  ;;  %vm2390_vm12 = vmand %vm1274_vm9, %vm1272_vm8 }
 0x146   :  { %v1181_v52 = vsub.f32 1.0, %v1180_v58  ;;  %vm1185_vm5 = vweird.f32 %v2324_v34  ;;  %v1278_v6 = vadd.s32 20, %v1268_v23  ;;  %v1277_v43 = vadd.s32 20, %v1239_v2 }
 0x147   :  { %v1067_v59 = vadd.f32 %v1055_v12, %v1045_v30  ;;  %v1166_v44 = vsub.f32 1.0, %v1165_v62  ;;  %v1028_v58 = vadd.f32 %v1021_v41, %v1002_v4  ;;  %vm1184_vm4 = vweird.f32 %v2297_v13 }
 0x148   :  { %v1182_v11 = vmul.f32 %v2324_v34, %v1181_v52  ;;  %vm1170_vm15 = vweird.f32 %v2367_v18  ;;  %vm1169_vm2 = vweird.f32 %v2299_v5  ;;  %v1173_v15 = vand.u32 2147483647, %v2299_v5 }
 0x149   :  { %v1091_v45 = vsub.f32 %v1067_v59, %v2165_v63  ;;  %v1191_v63 = vor.u32 1.1754944e-38, %v1190_v31  ;;  %vm1171_vm3 = vmor %vm1169_vm2, %vm1170_vm15 }
 0x14a   :  { %v1031_v1 = vpop.permute.xlu0 %1030  ;;  %vm1174_vm8 = vcmp.eq.f32.partialorder %v1173_v15, 8.507059e+37 }
 0x14b   :  { %v1038_v17 = vsel %vm652_vm6, %v1031_v1, %v1033_v49  ;;  %v1103_v50 = vmul.f32 2.0, %v1091_v45  ;;  %v1029_v49 = vadd.f32 %v2271_v39, %v1003_v19 }
 0x14c   :  { %v1044_v48 = vadd.f32 %v1038_v17, %v1026_v57  ;;  %v1053_v24 = vpop.permute.xlu1 %1052  ;;  %v1183_v57 = vadd.f32 %v2324_v34, %v1182_v11  ;;  %v1176_v11 = vor.u32 1.1754944e-38, %v1175_v60 }
 0x14d   :  { %v1107_v36 = vadd.f32 0.0009, %v1103_v50  ;;  %v1060_v9 = vsel %vm675_vm7, %v1053_v24, %v1055_v12  ;;  %v1188_v50 = vand.u32 2147483647, %v2297_v13 }
 0x14e   :  { %v1066_v3 = vadd.f32 %v1060_v9, %v1044_v48  ;;  %v1167_v48 = vmul.f32 %v2367_v18, %v1166_v44  ;;  %v1279_v9 = vsel %vm2401_vm13, %v1277_v43, %v1239_v2 }
 0x14f   :  { %v1111_v10 = vmul.f32 %v1107_v36, %v1099_v38  ;;  %vm2428_vm0 = vcmp.lt.s32.totalorder %v1279_v9, 16 }
 0x150   :  { %v1090_v32 = vsub.f32 %v1066_v3, %v2196_v46 }
 0x151   :  { %v1163_v12 = vmul.f32 %v1162_v47, %v1111_v10 }
 0x152   :  { %v1102_v38 = vmul.f32 2.0, %v1090_v32  ;;  %v1037_v30 = vpop.permute.xlu0 %1036 }
 0x153   :  { %v1047_v26 = vadd.f32 %v1037_v30, %v1029_v49  ;;  %v1195_v46 = vsub.f32 1.0, %v1163_v12  ;;  %v1039_v39 = vsel %vm652_vm6, %v2295_v42, %v1037_v30  ;;  %vm2410_vm6 = vmor %vm1184_vm4, %vm1185_vm5  ;;  %vm1305_vm5 = vcmp.eq.s32.totalorder %v2247_v61, 0 }
 0x154   :  { %v1106_v53 = vadd.f32 0.0009, %v1102_v38  ;;  %v1059_v59 = vpop.permute.xlu1 %1058  ;;  %v1046_v42 = vadd.f32 %v1039_v39, %v1028_v58  ;;  %v1187_v56 = vsel %vm2410_vm6, %v2324_v34, %v1183_v57  ;;  %v1168_v34 = vadd.f32 %v2367_v18, %v1167_v48 }
 0x155   :  { %v1069_v35 = vadd.f32 %v1059_v59, %v1047_v26  ;;  %v1199_v7 = vmax.f32 %v1195_v46, 0.0 }
 0x156   :  { %v1110_v45 = vmul.f32 %v1106_v53, %v2318_v20  ;;  %v1172_v38 = vsel %vm1171_vm3, %v2367_v18, %v1168_v34 }
 0x157   :  { %v1093_v22 = vsub.f32 %v1069_v35, %v2218_v25  ;;  %v1203_v1 = vmin.f32 %v1199_v7, 1.0  ;;  %v1280_v25 = vsel %vm2390_vm12, %v1278_v6, %v1268_v23  ;;  %v1177_v5 = vsel %vm1174_vm8, %v1176_v11, %v1172_v38 }
 0x158   :  { %v1148_v20 = vmul.f32 %v1147_v27, %v1110_v45  ;;  %vm2420_vm14 = vcmp.lt.s32.totalorder %v1280_v25, 16 }
 0x159   :  { %v1105_v17 = vmul.f32 2.0, %v1093_v22  ;;  %v1207_v19 = vmul.f32 0.5, %v1203_v1 }
 0x15a   :  { %v1057_v8 = vpop.permute.xlu0 %1056  ;;  %v1194_v29 = vsub.f32 1.0, %v1148_v20  ;;  %v1303_v20 = vshrl.u32 %v1210_v28, 7 }
 0x15b   :  { %v1109_v13 = vadd.f32 0.0009, %v1105_v17  ;;  %v1061_v24 = vsel %vm675_vm7, %v1057_v8, %v1059_v59  ;;  %vm1189_vm7 = vcmp.eq.f32.partialorder %v1188_v50, 8.507059e+37  ;;  %v1284_v47 = vsel %vm2420_vm14, %v1207_v19, 0.0 }
 0x15c   :  { %v1068_v36 = vadd.f32 %v1061_v24, %v1046_v42  ;;  %v1198_v51 = vmax.f32 %v1194_v29, 0.0  ;;  %v1192_v16 = vsel %vm1189_vm7, %v1191_v63, %v1187_v56  ;;  %v1288_v62 = vsel %vm1287_vm1, %v1284_v47, 0.0 }
 0x15d   :  { %v1113_v3 = vmul.f32 %v1109_v13, %v1101_v55  ;;  %vm1304_vm9 = vcmp.eq.s32.totalorder %v1303_v20, 0 }
 0x15e   :  { %v1092_v52 = vsub.f32 %v1068_v36, %v2227_v40  ;;  %v1202_v10 = vmin.f32 %v1198_v51, 1.0  ;;  %v1100_v40 = vadd.f32 0.0001, %v2371_v54  ;;  %vm1306_vm10 = vmand %vm1304_vm9, %vm1305_vm5 }
 0x15f   :  { %v1193_v33 = vmul.f32 %v1192_v16, %v1113_v3 }
 0x160   :  { %v1104_v32 = vmul.f32 2.0, %v1092_v52  ;;  %v1206_v49 = vmul.f32 0.5, %v1202_v10 }
 0x161   :  { %v1197_v12 = vsub.f32 1.0, %v1193_v33 }
 0x162   :  { %v1108_v27 = vadd.f32 0.0009, %v1104_v32  ;;  %v1283_v30 = vsel %vm2428_vm0, %v1206_v49, 0.0 }
 0x163   :  { %v1201_v2 = vmax.f32 %v1197_v12, 0.0  ;;  %v1289_v26 = vadd.f32 %v1288_v62, %v1283_v30 }
 0x164   :  { %v1112_v46 = vmul.f32 %v1108_v27, %v1100_v40 }
 0x165   :  { %v1205_v54 = vmin.f32 %v1201_v2, 1.0 }
 0x166   :  { %v1178_v4 = vmul.f32 %v1177_v5, %v1112_v46 }
 0x167   :  { %v1209_v59 = vmul.f32 0.5, %v1205_v54 }
 0x168   :  { %v1196_v41 = vsub.f32 1.0, %v1178_v4 }
 0x169   :  { %v1286_v18 = vsel %vm2420_vm14, %v1209_v59, 0.0 }
 0x16a   :  { %v1200_v53 = vmax.f32 %v1196_v41, 0.0  ;;  %v1291_v45 = vsel %vm1287_vm1, %v1286_v18, 0.0 }
 0x16c   :  { %v1204_v31 = vmin.f32 %v1200_v53, 1.0 }
 0x16e   :  { %v1208_v35 = vmul.f32 0.5, %v1204_v31 }
 0x170   :  { %v1285_v7 = vsel %vm2428_vm0, %v1208_v35, 0.0 }
 0x171   :  { %v1290_v6 = vadd.f32 %v1289_v26, %v1285_v7 }
 0x173   :  { %v1292_v44 = vadd.f32 %v1291_v45, %v1290_v6 }
 0x175   :  { %1293 = vadd.xlane.f32.xlu2 %v1292_v44 }
 0x1e8   :  { %v1294_v37 = vpop.xlane.xlu2 %1293 }
 0x1e9   :  { %v1295_v39 = vrot.slane %v1294_v37, 4 }
 0x1eb   :  { %v1296_v22 = vadd.f32 %v1295_v39, %v1294_v37 }
 0x1ed   :  { %v1297_v57 = vrot.slane %v1296_v22, 2 }
 0x1ef   :  { %v1298_v1 = vadd.f32 %v1297_v57, %v1296_v22 }
 0x1f1   :  { %v1299_v55 = vrot.slane %v1298_v1, 1 }
 0x1f3   :  { %v1300_v58 = vadd.f32 %v1299_v55, %v1298_v1 }
 0x1f5   :  { %1326 = vpush %v1300_v58 }
 0x226   :  { %s1327_s12 = spop %1326 }
 0x227   :  { %v1307_v43 = vstv %s1327_s12 }
 0x228   :  { %v1308_v17 = vsel %vm1306_vm10, %v1307_v43, 0.0 }
 0x229   :  { %1309 = vst [vmem:[#allocation2] sm:$0xff] %v1308_v17 }
 0x22a   :  { %1320 = dma.vmem_to_hbm [thread:$0]  %s1316_s8, 128, %s1318_s11, [#allocation3]  }
 0x22b   :  { %1366 = dma.done.wait [#allocation3], 128  }
 0x22c   :  { %1367 = vsyncadd [#allocation3], 4294967168 }
 0x22d   :  { %1325 = vsyncpa [#allocation3], 1 }

</bundles_post_ra>
